<compile_context>
chip_gen: v7x
topology: tpu7x:2x2x1
jax: 0.10.0
libtpu: 0.0.40
codegen_flags: <defaults>
</compile_context>

<pallas_src>
import jax
import jax.numpy as jnp
from jax.experimental import pallas as pl
from jax.experimental.pallas import tpu as pltpu

D_IN, D_H1, D_H2, D_OUT = 768, 600, 300, 150          # logical (PyTorch) dims
P_IN, P_H1, P_H2, P_OUT = 768, 640, 384, 256          # lane-padded kernel dims


def _round_up(n, m):
    return ((n + m - 1) // m) * m


def fusion_kernel(x_ref, w1_ref, b1_ref, w2_ref, b2_ref, w3_ref, b3_ref, o_ref):
    """One batch tile of the 3-layer MLP.

    Matmuls run on the MXU with bf16 operands / f32 accumulation; the bias add
    and ReLU epilogue stay in f32 on the VPU.
    """
    x = x_ref[...]                                                   # (TM, 768) bf16

    h1 = jnp.dot(x, w1_ref[...], preferred_element_type=jnp.float32)
    h1 = jnp.maximum(h1 + b1_ref[...], 0.0).astype(jnp.bfloat16)     # (TM, 640)

    h2 = jnp.dot(h1, w2_ref[...], preferred_element_type=jnp.float32)
    h2 = jnp.maximum(h2 + b2_ref[...], 0.0).astype(jnp.bfloat16)     # (TM, 384)

    out = jnp.dot(h2, w3_ref[...], preferred_element_type=jnp.float32)
    o_ref[...] = (out + b3_ref[...]).astype(o_ref.dtype)             # (TM, 256) f32


def prepare_params(params):
    """Zero-pad feature dims to 128 multiples (numerically exact) and cast the
    weights to bf16 for the MXU.  Biases stay f32 (epilogue is f32)."""
    def pad_w(w, d_out_pad):
        d_in, d_out = w.shape
        d_in_pad = _round_up(d_in, 128)
        wp = jnp.zeros((d_in_pad, d_out_pad), jnp.float32).at[:d_in, :d_out].set(w)
        return wp.astype(jnp.bfloat16)

    def pad_b(b, d_out_pad):
        return jnp.zeros((1, d_out_pad), jnp.float32).at[:, : b.shape[1]].set(b)

    return {
        "w1": pad_w(params["w1"], P_H1), "b1": pad_b(params["b1"], P_H1),
        "w2": pad_w(params["w2"], P_H2), "b2": pad_b(params["b2"], P_H2),
        "w3": pad_w(params["w3"], P_OUT), "b3": pad_b(params["b3"], P_OUT),
    }


def fusion_forward(x, prepared):
    """x: (B, 768) float32.  prepared: output of prepare_params.  -> (B, 150) f32."""
    B = x.shape[0]
    # Batch tile: 256 rows when the batch is large (amortizes per-step overhead,
    # keeps the MXU M-dim dense); for tiny batches just round up to a sublane
    # multiple so a single grid step covers everything.
    TM = 256 if B >= 256 else _round_up(max(B, 8), 8)
    B_pad = _round_up(B, TM)

    # Pad batch + cast activations to bf16 (halves the input DMA stream).
    xp = jnp.zeros((B_pad, P_IN), jnp.bfloat16).at[:B, :].set(x.astype(jnp.bfloat16))

    const = lambda i: (0, 0)   # weights/biases: same block every step -> DMA'd once

    flops = 2 * B_pad * (P_IN * P_H1 + P_H1 * P_H2 + P_H2 * P_OUT)
    bytes_accessed = (
        xp.size * 2
        + sum(prepared[k].size * 2 for k in ("w1", "w2", "w3"))
        + sum(prepared[k].size * 4 for k in ("b1", "b2", "b3"))
        + B_pad * P_OUT * 4
    )

    out = pl.pallas_call(
        fusion_kernel,
        out_shape=jax.ShapeDtypeStruct((B_pad, P_OUT), jnp.float32),
        grid=(B_pad // TM,),
        in_specs=[
            pl.BlockSpec((TM, P_IN), lambda i: (i, 0)),   # x: one batch tile per step
            pl.BlockSpec((P_IN, P_H1), const),            # resident weights / biases
            pl.BlockSpec((1, P_H1), const),
            pl.BlockSpec((P_H1, P_H2), const),
            pl.BlockSpec((1, P_H2), const),
            pl.BlockSpec((P_H2, P_OUT), const),
            pl.BlockSpec((1, P_OUT), const),
        ],
        out_specs=pl.BlockSpec((TM, P_OUT), lambda i: (i, 0)),
        compiler_params=pltpu.CompilerParams(
            dimension_semantics=("parallel",),            # shard batch over TCs (v7x)
            vmem_limit_bytes=32 * 1024 * 1024,            # plenty; fits v7x 64 MiB VMEM
        ),
        cost_estimate=pl.CostEstimate(
            flops=flops, transcendentals=0, bytes_accessed=bytes_accessed),
    )(xp, prepared["w1"], prepared["b1"], prepared["w2"], prepared["b2"],
      prepared["w3"], prepared["b3"])

    return out[:B, :D_OUT]


def init_params(key):
    """Deterministic synthetic init (PyTorch nn.Linear-style uniform bounds).
    Weights stored as [in_features, out_features] so the kernel is plain x @ W."""
    ks = jax.random.split(key, 6)

    def linear(kw, kb, d_in, d_out):
        bound = 1.0 / jnp.sqrt(jnp.float32(d_in))
        w = jax.random.uniform(kw, (d_in, d_out), jnp.float32, -bound, bound)
        b = jax.random.uniform(kb, (1, d_out), jnp.float32, -bound, bound)
        return w, b

    w1, b1 = linear(ks[0], ks[1], D_IN, D_H1)
    w2, b2 = linear(ks[2], ks[3], D_H1, D_H2)
    w3, b3 = linear(ks[4], ks[5], D_H2, D_OUT)
    return {"w1": w1, "b1": b1, "w2": w2, "b2": b2, "w3": w3, "b3": b3}


def fusion_reference(x, p):
    """Pure f32 reference matching the PyTorch module semantics."""
    h1 = jnp.maximum(x @ p["w1"] + p["b1"], 0.0)
    h2 = jnp.maximum(h1 @ p["w2"] + p["b2"], 0.0)
    return h2 @ p["w3"] + p["b3"]


if __name__ == "__main__":
    key = jax.random.PRNGKey(0)
    k_param, k_x = jax.random.split(key)

    params = init_params(k_param)
    prepared = prepare_params(params)

    B = 8
    x = jax.random.normal(k_x, (B, D_IN), jnp.float32)

    out = fusion_forward(x, prepared)
    out = jax.block_until_ready(out)

    ref = fusion_reference(x, params)
    assert out.shape == (B, D_OUT), out.shape
    # bf16 MXU operands (f32 accumulation) -> relaxed tolerance vs the f32 reference.
    assert jnp.allclose(out, ref, atol=5e-2, rtol=5e-2), (
        "mismatch vs reference; max abs err "
        f"{float(jnp.max(jnp.abs(out - ref))):.3e}"
    )

    print("KERNEL_OK")
</pallas_src>

<mosaic_0001>
module attributes {stable_mosaic.version = 11 : i64} {
  func.func @fusion_kernel(%arg0: i32, %arg1: memref<8x768xbf16, #tpu.memory_space<vmem>>, %arg2: memref<768x640xbf16, #tpu.memory_space<vmem>>, %arg3: memref<1x640xf32, #tpu.memory_space<vmem>>, %arg4: memref<640x384xbf16, #tpu.memory_space<vmem>>, %arg5: memref<1x384xf32, #tpu.memory_space<vmem>>, %arg6: memref<384x256xbf16, #tpu.memory_space<vmem>>, %arg7: memref<1x256xf32, #tpu.memory_space<vmem>>, %arg8: memref<8x256xf32, #tpu.memory_space<vmem>>) attributes {dimension_semantics = [#tpu.dimension_semantics<parallel>], iteration_bounds = array<i64: 1>, scalar_prefetch = 0 : i64, scratch_operands = 0 : i64, tpu.core_type = #tpu.core_type<tc>, window_params = [{transform_indices = @transform_0, window_bounds = array<i64: 8, 768>}, {pipeline_mode = #tpu.pipeline_mode<synchronous>, transform_indices = @transform_1, window_bounds = array<i64: 768, 640>}, {pipeline_mode = #tpu.pipeline_mode<synchronous>, transform_indices = @transform_2, window_bounds = array<i64: 1, 640>}, {pipeline_mode = #tpu.pipeline_mode<synchronous>, transform_indices = @transform_3, window_bounds = array<i64: 640, 384>}, {pipeline_mode = #tpu.pipeline_mode<synchronous>, transform_indices = @transform_4, window_bounds = array<i64: 1, 384>}, {pipeline_mode = #tpu.pipeline_mode<synchronous>, transform_indices = @transform_5, window_bounds = array<i64: 384, 256>}, {pipeline_mode = #tpu.pipeline_mode<synchronous>, transform_indices = @transform_6, window_bounds = array<i64: 1, 256>}, {transform_indices = @transform_7, window_bounds = array<i64: 8, 256>}]} {
    %c0 = arith.constant 0 : index
    %c0_0 = arith.constant 0 : index
    %0 = vector.load %arg1[%c0, %c0_0] : memref<8x768xbf16, #tpu.memory_space<vmem>>, vector<8x768xbf16>
    %c0_1 = arith.constant 0 : index
    %c0_2 = arith.constant 0 : index
    %1 = vector.load %arg2[%c0_1, %c0_2] : memref<768x640xbf16, #tpu.memory_space<vmem>>, vector<768x640xbf16>
    %cst = arith.constant dense<0.000000e+00> : vector<8x640xf32>
    %2 = tpu.matmul %0, %1, %cst {dimension_numbers = #tpu.dot_dimension_numbers<[1], [0], [0], [1], [0, 0, 1, 1], [], []>} : vector<8x768xbf16>, vector<768x640xbf16>, vector<8x640xf32> -> vector<8x640xf32>
    %c0_3 = arith.constant 0 : index
    %c0_4 = arith.constant 0 : index
    %3 = vector.load %arg3[%c0_3, %c0_4] : memref<1x640xf32, #tpu.memory_space<vmem>>, vector<1x640xf32>
    %4 = vector.broadcast %3 : vector<1x640xf32> to vector<8x640xf32>
    %5 = arith.addf %2, %4 : vector<8x640xf32>
    %cst_5 = arith.constant 0.000000e+00 : f32
    %6 = vector.broadcast %cst_5 : f32 to vector<8x640xf32>
    %7 = arith.maximumf %5, %6 : vector<8x640xf32>
    %8 = arith.truncf %7 : vector<8x640xf32> to vector<8x640xbf16>
    %c0_6 = arith.constant 0 : index
    %c0_7 = arith.constant 0 : index
    %9 = vector.load %arg4[%c0_6, %c0_7] : memref<640x384xbf16, #tpu.memory_space<vmem>>, vector<640x384xbf16>
    %cst_8 = arith.constant dense<0.000000e+00> : vector<8x384xf32>
    %10 = tpu.matmul %8, %9, %cst_8 {dimension_numbers = #tpu.dot_dimension_numbers<[1], [0], [0], [1], [0, 0, 1, 1], [], []>} : vector<8x640xbf16>, vector<640x384xbf16>, vector<8x384xf32> -> vector<8x384xf32>
    %c0_9 = arith.constant 0 : index
    %c0_10 = arith.constant 0 : index
    %11 = vector.load %arg5[%c0_9, %c0_10] : memref<1x384xf32, #tpu.memory_space<vmem>>, vector<1x384xf32>
    %12 = vector.broadcast %11 : vector<1x384xf32> to vector<8x384xf32>
    %13 = arith.addf %10, %12 : vector<8x384xf32>
    %cst_11 = arith.constant 0.000000e+00 : f32
    %14 = vector.broadcast %cst_11 : f32 to vector<8x384xf32>
    %15 = arith.maximumf %13, %14 : vector<8x384xf32>
    %16 = arith.truncf %15 : vector<8x384xf32> to vector<8x384xbf16>
    %c0_12 = arith.constant 0 : index
    %c0_13 = arith.constant 0 : index
    %17 = vector.load %arg6[%c0_12, %c0_13] : memref<384x256xbf16, #tpu.memory_space<vmem>>, vector<384x256xbf16>
    %cst_14 = arith.constant dense<0.000000e+00> : vector<8x256xf32>
    %18 = tpu.matmul %16, %17, %cst_14 {dimension_numbers = #tpu.dot_dimension_numbers<[1], [0], [0], [1], [0, 0, 1, 1], [], []>} : vector<8x384xbf16>, vector<384x256xbf16>, vector<8x256xf32> -> vector<8x256xf32>
    %c0_15 = arith.constant 0 : index
    %c0_16 = arith.constant 0 : index
    %19 = vector.load %arg7[%c0_15, %c0_16] : memref<1x256xf32, #tpu.memory_space<vmem>>, vector<1x256xf32>
    %20 = vector.broadcast %19 : vector<1x256xf32> to vector<8x256xf32>
    %21 = arith.addf %18, %20 : vector<8x256xf32>
    %c0_17 = arith.constant 0 : index
    %c0_18 = arith.constant 0 : index
    %22 = vector.load %arg8[%c0_17, %c0_18] : memref<8x256xf32, #tpu.memory_space<vmem>>, vector<8x256xf32>
    tpu.vector_store %arg8[%c0_17, %c0_18], %21 {strides = array<i32>} : memref<8x256xf32, #tpu.memory_space<vmem>>, vector<8x256xf32>,
    return
  }
  func.func @transform_0(%arg0: i32) -> (i32, i32) {
    %c0_i32 = arith.constant 0 : i32
    %c0_i32_0 = arith.constant 0 : i32
    return %arg0, %c0_i32 : i32, i32
  }
  func.func @transform_1(%arg0: i32) -> (i32, i32) {
    %c0_i32 = arith.constant 0 : i32
    %c0_i32_0 = arith.constant 0 : i32
    %c0_i32_1 = arith.constant 0 : i32
    return %c0_i32, %c0_i32_0 : i32, i32
  }
  func.func @transform_2(%arg0: i32) -> (i32, i32) {
    %c0_i32 = arith.constant 0 : i32
    %c0_i32_0 = arith.constant 0 : i32
    %c0_i32_1 = arith.constant 0 : i32
    return %c0_i32, %c0_i32_0 : i32, i32
  }
  func.func @transform_3(%arg0: i32) -> (i32, i32) {
    %c0_i32 = arith.constant 0 : i32
    %c0_i32_0 = arith.constant 0 : i32
    %c0_i32_1 = arith.constant 0 : i32
    return %c0_i32, %c0_i32_0 : i32, i32
  }
  func.func @transform_4(%arg0: i32) -> (i32, i32) {
    %c0_i32 = arith.constant 0 : i32
    %c0_i32_0 = arith.constant 0 : i32
    %c0_i32_1 = arith.constant 0 : i32
    return %c0_i32, %c0_i32_0 : i32, i32
  }
  func.func @transform_5(%arg0: i32) -> (i32, i32) {
    %c0_i32 = arith.constant 0 : i32
    %c0_i32_0 = arith.constant 0 : i32
    %c0_i32_1 = arith.constant 0 : i32
    return %c0_i32, %c0_i32_0 : i32, i32
  }
  func.func @transform_6(%arg0: i32) -> (i32, i32) {
    %c0_i32 = arith.constant 0 : i32
    %c0_i32_0 = arith.constant 0 : i32
    %c0_i32_1 = arith.constant 0 : i32
    return %c0_i32, %c0_i32_0 : i32, i32
  }
  func.func @transform_7(%arg0: i32) -> (i32, i32) {
    %c0_i32 = arith.constant 0 : i32
    %c0_i32_0 = arith.constant 0 : i32
    return %arg0, %c0_i32 : i32, i32
  }
}

</mosaic_0001>

<bundles_post_ra>
// kernel: tpu_custom_call.1
= control target key start
LH: loop header
LB: loop body
LE: loop exit
PB: predicated region body
PF: predicated region fallthrough
CT: control target
= control target key end

     0   :  { %12 = vsyncpa [#allocation3], 0  ;;  %s5017_s0 = inlined_call_operand.hbm [shape: bf16[8,768], index: 0, kind: input, shape index: {}]   ;;  %s5018_s1 = inlined_call_operand.hbm [shape: bf16[768,640], index: 1, kind: input, shape index: {}]   ;;  %s5019_s2 = inlined_call_operand.vmem [shape: f32[1,640], index: 2, kind: input, shape index: {}]   ;;  %s5020_s3 = inlined_call_operand.hbm [shape: bf16[640,384], index: 3, kind: input, shape index: {}]   ;;  %s5021_s4 = inlined_call_operand.vmem [shape: f32[1,384], index: 4, kind: input, shape index: {}]   ;;  %s5022_s5 = inlined_call_operand.hbm [shape: bf16[384,256], index: 5, kind: input, shape index: {}]   ;;  %s5023_s6 = inlined_call_operand.vmem [shape: f32[1,256], index: 6, kind: input, shape index: {}]   ;;  %s5024_s7 = inlined_call_operand.hbm [shape: f32[8,256], index: 7, kind: output, shape index: {}]  }
   0x1   :  { %13 = vsyncpa [#allocation6], 0 }
   0x2   :  { %14 = vsyncpa [#allocation9], 0 }
   0x3   :  { %15 = vsyncpa [#allocation4], 0  ;;  %s4806_s24 = smov [#allocation5]   ;;  %s4688_s28 = scalar_lea.hbm %s5018_s1, 30720 }
   0x4   :  { %s31_s25 = sshll.u32 %s4806_s24, 4  ;;  %p4689_p0 = scmp.ne.s32.totalorder %s5018_s1, %s4688_s28  ;;  %s32_s25 = int_to_ptr.vmem [resolvable:$true] %s31_s25 }
   0x5   :  { %p4692_p1 = scmp.lt.u32.totalorder %s4688_s28, %s5018_s1 }
   0x7   :  { %p4694_p2 = pnand %p4692_p1, %p4689_p0 }
   0x9   :  { %4697 = shalt.err (!%p4694_p2)
}
   0xa   :  { %s4698_s10 = scalar_lea.vmem %s32_s25, 30720  ;;  %p4703_p4 = scmp.lt.s32.totalorder %s32_s25, %s32_s25 }
   0xb   :  { %p4699_p3 = scmp.ne.s32.totalorder %s32_s25, %s4698_s10  ;;  %p4704_p5 = scmp.lt.s32.totalorder %s4698_s10, %s4698_s10 }
   0xd   :  { %p4705_p6 = por %p4704_p5, %p4703_p4 }
   0xf   :  { %p4706_p7 = pnand %p4705_p6, %p4699_p3 }
  0x11   :  { %4709 = shalt.err (!%p4706_p7)
}
  0x12   :  { %s4807_s11 = smov 320   ;;  %s4808_s12 = smov 20  }
  0x13   :  { %37 = dma.hbm_to_vmem [thread:$0]  %s5018_s1, 30720, %s32_s25, [#allocation6], %s4807_s11, %s4807_s11, %s4808_s12  }
  0x14   :  { %s4809_s15 = smov [#allocation2]   ;;  %s4810_s17 = smov [#allocation7]  }
  0x15   :  { %s22_s16 = sshll.u32 %s4809_s15, 4  ;;  %s45_s18 = sshll.u32 %s4810_s17, 4  ;;  %s23_s16 = int_to_ptr.vmem [resolvable:$true] %s22_s16  ;;  %s46_s18 = int_to_ptr.vmem [resolvable:$true] %s45_s18 }
  0x16   :  { %s4710_s21 = scalar_lea.hbm %s5017_s0, 384 }
  0x17   :  { %p4711_p8 = scmp.ne.s32.totalorder %s5017_s0, %s4710_s21  ;;  %p4714_p9 = scmp.lt.u32.totalorder %s4710_s21, %s5017_s0 }
  0x19   :  { %p4716_p10 = pnand %p4714_p9, %p4711_p8 }
  0x1b   :  { %4719 = shalt.err (!%p4716_p10)
}
  0x1c   :  { %s4720_s1 = scalar_lea.vmem %s23_s16, 384  ;;  %p4725_p12 = scmp.lt.s32.totalorder %s23_s16, %s23_s16 }
  0x1d   :  { %p4721_p11 = scmp.ne.s32.totalorder %s23_s16, %s4720_s1  ;;  %p4726_p13 = scmp.lt.s32.totalorder %s4720_s1, %s4720_s1 }
  0x1f   :  { %p4727_p0 = por %p4726_p13, %p4725_p12 }
  0x21   :  { %p4728_p1 = pnand %p4727_p0, %p4721_p11 }
  0x23   :  { %4731 = shalt.err (!%p4728_p1)
}
  0x24   :  { %25 = dma.hbm_to_vmem [thread:$0]  %s5017_s0, 384, %s23_s16, [#allocation3]  }
  0x25   :  { %s4732_s30 = scalar_lea.hbm %s5020_s3, 15360 }
  0x26   :  { %p4733_p2 = scmp.ne.s32.totalorder %s5020_s3, %s4732_s30  ;;  %p4736_p3 = scmp.lt.u32.totalorder %s4732_s30, %s5020_s3 }
  0x28   :  { %p4738_p4 = pnand %p4736_p3, %p4733_p2 }
  0x2a   :  { %4741 = shalt.err (!%p4738_p4)
}
  0x2b   :  { %s4742_s12 = scalar_lea.vmem %s46_s18, 15360  ;;  %p4747_p6 = scmp.lt.s32.totalorder %s46_s18, %s46_s18 }
  0x2c   :  { %p4743_p5 = scmp.ne.s32.totalorder %s46_s18, %s4742_s12  ;;  %p4748_p7 = scmp.lt.s32.totalorder %s4742_s12, %s4742_s12 }
  0x2e   :  { %p4749_p8 = por %p4748_p7, %p4747_p6 }
  0x30   :  { %p4750_p9 = pnand %p4749_p8, %p4743_p5 }
  0x32   :  { %4753 = shalt.err (!%p4750_p9)
}
  0x33   :  { %s4811_s0 = smov 192   ;;  %s4812_s13 = smov 12  }
  0x34   :  { %51 = dma.hbm_to_vmem [thread:$0]  %s5020_s3, 15360, %s46_s18, [#allocation6], %s4811_s0, %s4811_s0, %s4812_s13  }
  0x35   :  { %s4813_s16 = smov [#allocation8]   ;;  %s4754_s21 = scalar_lea.hbm %s5022_s5, 6144 }
  0x36   :  { %s59_s17 = sshll.u32 %s4813_s16, 4  ;;  %p4755_p10 = scmp.ne.s32.totalorder %s5022_s5, %s4754_s21  ;;  %s60_s17 = int_to_ptr.vmem [resolvable:$true] %s59_s17 }
  0x37   :  { %p4758_p11 = scmp.lt.u32.totalorder %s4754_s21, %s5022_s5 }
  0x39   :  { %p4760_p12 = pnand %p4758_p11, %p4755_p10 }
  0x3b   :  { %4763 = shalt.err (!%p4760_p12)
}
  0x3c   :  { %s4764_s1 = scalar_lea.vmem %s60_s17, 6144  ;;  %p4769_p0 = scmp.lt.s32.totalorder %s60_s17, %s60_s17 }
  0x3d   :  { %p4765_p13 = scmp.ne.s32.totalorder %s60_s17, %s4764_s1  ;;  %p4770_p1 = scmp.lt.s32.totalorder %s4764_s1, %s4764_s1 }
  0x3f   :  { %p4771_p2 = por %p4770_p1, %p4769_p0 }
  0x41   :  { %p4772_p3 = pnand %p4771_p2, %p4765_p13 }
  0x43   :  { %4775 = shalt.err (!%p4772_p3)
}
  0x44   :  { %s4814_s3 = smov 128   ;;  %s4815_s18 = smov 8  }
  0x45   :  { %65 = dma.hbm_to_vmem [thread:$0]  %s5022_s5, 6144, %s60_s17, [#allocation9], %s4814_s3, %s4814_s3, %s4815_s18  }
  0x46   :  { %4798 = dma.done.wait [#allocation3], 384  }
  0x47   :  { %4799 = vsyncadd [#allocation3], 4294966912 }
  0x48   :  { %4800 = dma.done.wait [#allocation6], 46080  }
  0x49   :  { %4801 = vsyncadd [#allocation6], 4294921216 }
  0x4a   :  { %4802 = dma.done.wait [#allocation9], 6144  }
  0x4b   :  { %4803 = vsyncadd [#allocation9], 4294961152  ;;  %v4114_v0 = vld [vmem:[#allocation5 + $0x4] ss:$20 sps:$4 sm:$0xff]   ;;  %v4116_v1 = vld [vmem:[#allocation5 + $0xc] ss:$20 sps:$4 sm:$0xff]  }
  0x4c   :  { %1668 = vmatprep.subr.bf16.mxu0 %v4114_v0  ;;  %v4118_v2 = vld [vmem:[#allocation5] ss:$20 sps:$4 sm:$0xff]   ;;  %v4119_v3 = vld [vmem:[#allocation5 + $0x8] ss:$20 sps:$4 sm:$0xff]   ;;  %1791 = vmatprep.subr.bf16.mxu1 %v4116_v1  ;;  %v4125_v7 = vld [vmem:[#allocation5 + $0x30] ss:$20 sps:$4 sm:$0xff]  }
  0x4d   :  { %v4120_v4 = vld [vmem:[#allocation5 + $0x2c] ss:$20 sps:$4 sm:$0xff]   ;;  %1669 = vmatpush1.bf16.msra.mxu0 %v4118_v2  ;;  %1792 = vmatpush1.bf16.msra.mxu1 %v4119_v3  ;;  %v4122_v5 = vld [vmem:[#allocation5 + $0x34] ss:$20 sps:$4 sm:$0xff]   ;;  %v4128_v9 = vld [vmem:[#allocation5 + $0x5c] ss:$20 sps:$4 sm:$0xff]  }
  0x4e   :  { %v4124_v6 = vld [vmem:[#allocation5 + $0x28] ss:$20 sps:$4 sm:$0xff]   ;;  %1670 = vmatprep.subr.bf16.mxu0 %v4120_v4  ;;  %1793 = vmatprep.subr.bf16.mxu1 %v4122_v5  ;;  %v4130_v10 = vld [vmem:[#allocation5 + $0x50] ss:$20 sps:$4 sm:$0xff]   ;;  %v4131_v11 = vld [vmem:[#allocation5 + $0x58] ss:$20 sps:$4 sm:$0xff]  }
  0x4f   :  { %v4126_v8 = vld [vmem:[#allocation5 + $0x54] ss:$20 sps:$4 sm:$0xff]   ;;  %v4132_v12 = vld [vmem:[#allocation5 + $0x7c] ss:$20 sps:$4 sm:$0xff]   ;;  %v4134_v13 = vld [vmem:[#allocation5 + $0x84] ss:$20 sps:$4 sm:$0xff]  }
  0x50   :  { %v4136_v14 = vld [vmem:[#allocation5 + $0x78] ss:$20 sps:$4 sm:$0xff]   ;;  %v4137_v15 = vld [vmem:[#allocation5 + $0x80] ss:$20 sps:$4 sm:$0xff]   ;;  %v4143_v19 = vld [vmem:[#allocation5 + $0xa8] ss:$20 sps:$4 sm:$0xff]  }
  0x51   :  { %1671 = vmatpush1.bf16.msra.mxu0 %v4124_v6  ;;  %1794 = vmatpush1.bf16.msra.mxu1 %v4125_v7  ;;  %v4138_v16 = vld [vmem:[#allocation5 + $0xa4] ss:$20 sps:$4 sm:$0xff]   ;;  %v4140_v17 = vld [vmem:[#allocation5 + $0xac] ss:$20 sps:$4 sm:$0xff]   ;;  %v4146_v21 = vld [vmem:[#allocation5 + $0xd4] ss:$20 sps:$4 sm:$0xff]  }
  0x52   :  { %1672 = vmatprep.subr.bf16.mxu0 %v4126_v8  ;;  %1795 = vmatprep.subr.bf16.mxu1 %v4128_v9  ;;  %v4142_v18 = vld [vmem:[#allocation5 + $0xa0] ss:$20 sps:$4 sm:$0xff]   ;;  %v4148_v22 = vld [vmem:[#allocation5 + $0xc8] ss:$20 sps:$4 sm:$0xff]   ;;  %v4149_v23 = vld [vmem:[#allocation5 + $0xd0] ss:$20 sps:$4 sm:$0xff]  }
  0x53   :  { %v4144_v20 = vld [vmem:[#allocation5 + $0xcc] ss:$20 sps:$4 sm:$0xff]   ;;  %v4150_v24 = vld [vmem:[#allocation5 + $0xf4] ss:$20 sps:$4 sm:$0xff]   ;;  %v4152_v25 = vld [vmem:[#allocation5 + $0xfc] ss:$20 sps:$4 sm:$0xff]  }
  0x54   :  { %v4154_v26 = vld [vmem:[#allocation5 + $0xf0] ss:$20 sps:$4 sm:$0xff]   ;;  %v4155_v27 = vld [vmem:[#allocation5 + $0xf8] ss:$20 sps:$4 sm:$0xff]   ;;  %v4161_v31 = vld [vmem:[#allocation5 + $0x120] ss:$20 sps:$4 sm:$0xff]  }
  0x55   :  { %1673 = vmatpush1.bf16.msra.mxu0 %v4130_v10  ;;  %1796 = vmatpush1.bf16.msra.mxu1 %v4131_v11  ;;  %v4156_v28 = vld [vmem:[#allocation5 + $0x11c] ss:$20 sps:$4 sm:$0xff]   ;;  %v4158_v29 = vld [vmem:[#allocation5 + $0x124] ss:$20 sps:$4 sm:$0xff]   ;;  %v4164_v33 = vld [vmem:[#allocation5 + $0x14c] ss:$20 sps:$4 sm:$0xff]  }
  0x56   :  { %1674 = vmatprep.subr.bf16.mxu0 %v4132_v12  ;;  %1797 = vmatprep.subr.bf16.mxu1 %v4134_v13  ;;  %v4160_v30 = vld [vmem:[#allocation5 + $0x118] ss:$20 sps:$4 sm:$0xff]   ;;  %v4166_v34 = vld [vmem:[#allocation5 + $0x140] ss:$20 sps:$4 sm:$0xff]   ;;  %v4167_v35 = vld [vmem:[#allocation5 + $0x148] ss:$20 sps:$4 sm:$0xff]  }
  0x57   :  { %v4162_v32 = vld [vmem:[#allocation5 + $0x144] ss:$20 sps:$4 sm:$0xff]   ;;  %v4168_v36 = vld [vmem:[#allocation5 + $0x16c] ss:$20 sps:$4 sm:$0xff]   ;;  %v4170_v37 = vld [vmem:[#allocation5 + $0x174] ss:$20 sps:$4 sm:$0xff]  }
  0x58   :  { %v4172_v38 = vld [vmem:[#allocation5 + $0x168] ss:$20 sps:$4 sm:$0xff]   ;;  %v4173_v39 = vld [vmem:[#allocation5 + $0x170] ss:$20 sps:$4 sm:$0xff]   ;;  %v4179_v43 = vld [vmem:[#allocation5 + $0x198] ss:$20 sps:$4 sm:$0xff]  }
  0x59   :  { %1675 = vmatpush1.bf16.msra.mxu0 %v4136_v14  ;;  %1798 = vmatpush1.bf16.msra.mxu1 %v4137_v15  ;;  %v4174_v40 = vld [vmem:[#allocation5 + $0x194] ss:$20 sps:$4 sm:$0xff]   ;;  %v4176_v41 = vld [vmem:[#allocation5 + $0x19c] ss:$20 sps:$4 sm:$0xff]   ;;  %v4182_v45 = vld [vmem:[#allocation5 + $0x1c4] ss:$20 sps:$4 sm:$0xff]  }
  0x5a   :  { %1676 = vmatprep.subr.bf16.mxu0 %v4138_v16  ;;  %1799 = vmatprep.subr.bf16.mxu1 %v4140_v17  ;;  %v4178_v42 = vld [vmem:[#allocation5 + $0x190] ss:$20 sps:$4 sm:$0xff]   ;;  %v81_v46 = vld [vmem:[#allocation2] sm:$0xff]  ;;  %v4185_v49 = vld [vmem:[#allocation5 + $0x1c0] ss:$20 sps:$4 sm:$0xff]   ;;  %vm4817_vm0 = vmmov 0  }
  0x5b   :  { %v4180_v44 = vld [vmem:[#allocation5 + $0x1bc] ss:$20 sps:$4 sm:$0xff]   ;;  %v4184_v47 = vld [vmem:[#allocation5 + $0x1b8] ss:$20 sps:$4 sm:$0xff]   ;;  %v4908_v48 = vcombine.high %v81_v46, %v81_v46  ;;  %v4190_v52 = vld [vmem:[#allocation5 + $0x1e0] ss:$20 sps:$4 sm:$0xff]   ;;  %v4912_v5 = vcombine.low %v81_v46, %v81_v46 }
  0x5c   :  { %v4186_v50 = vld [vmem:[#allocation5 + $0x1e4] ss:$20 sps:$4 sm:$0xff]   ;;  %v4188_v51 = vld [vmem:[#allocation5 + $0x1ec] ss:$20 sps:$4 sm:$0xff]   ;;  %v4191_v53 = vld [vmem:[#allocation5 + $0x1e8] ss:$20 sps:$4 sm:$0xff]  }
  0x5d   :  { %1677 = vmatpush1.bf16.msra.mxu0 %v4142_v18  ;;  %1800 = vmatpush1.bf16.msra.mxu1 %v4143_v19  ;;  %v4192_v54 = vld [vmem:[#allocation5 + $0x20c] ss:$20 sps:$4 sm:$0xff]   ;;  %v4194_v55 = vld [vmem:[#allocation5 + $0x214] ss:$20 sps:$4 sm:$0xff]   ;;  %v4197_v57 = vld [vmem:[#allocation5 + $0x210] ss:$20 sps:$4 sm:$0xff]  }
  0x5e   :  { %1678 = vmatprep.subr.bf16.mxu0 %v4144_v20  ;;  %1801 = vmatprep.subr.bf16.mxu1 %v4146_v21  ;;  %v4196_v56 = vld [vmem:[#allocation5 + $0x208] ss:$20 sps:$4 sm:$0xff]   ;;  %v4202_v60 = vld [vmem:[#allocation5 + $0x230] ss:$20 sps:$4 sm:$0xff]   ;;  %v4203_v61 = vld [vmem:[#allocation5 + $0x238] ss:$20 sps:$4 sm:$0xff]  }
  0x5f   :  { %1700 = vmatprep.mubr.bf16.mxu0 %v4908_v48  ;;  %1823 = vmatprep.mubr.bf16.mxu1 %v4908_v48  ;;  %v4198_v58 = vld [vmem:[#allocation5 + $0x234] ss:$20 sps:$4 sm:$0xff]   ;;  %v4200_v59 = vld [vmem:[#allocation5 + $0x23c] ss:$20 sps:$4 sm:$0xff]   ;;  %v4206_v63 = vld [vmem:[#allocation5 + $0x264] ss:$20 sps:$4 sm:$0xff]  }
  0x60   :  { %v4204_v62 = vld [vmem:[#allocation5 + $0x25c] ss:$20 sps:$4 sm:$0xff]   ;;  %v4208_v0 = vld [vmem:[#allocation5 + $0x258] ss:$20 sps:$4 sm:$0xff]   ;;  %v4209_v1 = vld [vmem:[#allocation5 + $0x260] ss:$20 sps:$4 sm:$0xff]  }
  0x61   :  { %1679 = vmatpush1.bf16.msra.mxu0 %v4148_v22  ;;  %1802 = vmatpush1.bf16.msra.mxu1 %v4149_v23  ;;  %v4213_v2 = vld [vmem:[#allocation5 + $0x284] ss:$20 sps:$4 sm:$0xff]   ;;  %v4216_v3 = vld [vmem:[#allocation5 + $0x28c] ss:$20 sps:$4 sm:$0xff]   ;;  %v4214_v6 = vld [vmem:[#allocation5 + $0x288] ss:$20 sps:$4 sm:$0xff]  }
  0x62   :  { %1680 = vmatprep.subr.bf16.mxu0 %v4150_v24  ;;  %1803 = vmatprep.subr.bf16.mxu1 %v4152_v25  ;;  %v4211_v4 = vld [vmem:[#allocation5 + $0x280] ss:$20 sps:$4 sm:$0xff]   ;;  %v4218_v9 = vld [vmem:[#allocation5 + $0x2a8] ss:$20 sps:$4 sm:$0xff]   ;;  %v4221_v10 = vld [vmem:[#allocation5 + $0x2b0] ss:$20 sps:$4 sm:$0xff]  }
  0x63   :  { %v4220_v7 = vld [vmem:[#allocation5 + $0x2ac] ss:$20 sps:$4 sm:$0xff]   ;;  %v4223_v8 = vld [vmem:[#allocation5 + $0x2b4] ss:$20 sps:$4 sm:$0xff]   ;;  %v4229_v12 = vld [vmem:[#allocation5 + $0x2dc] ss:$20 sps:$4 sm:$0xff]  }
  0x64   :  { %v4226_v11 = vld [vmem:[#allocation5 + $0x2d4] ss:$20 sps:$4 sm:$0xff]   ;;  %v4224_v13 = vld [vmem:[#allocation5 + $0x2d0] ss:$20 sps:$4 sm:$0xff]   ;;  %v4227_v14 = vld [vmem:[#allocation5 + $0x2d8] ss:$20 sps:$4 sm:$0xff]  }
  0x65   :  { %1681 = vmatpush1.bf16.msra.mxu0 %v4154_v26  ;;  %1804 = vmatpush1.bf16.msra.mxu1 %v4155_v27  ;;  %v4232_v15 = vld [vmem:[#allocation5 + $0x2fc] ss:$20 sps:$4 sm:$0xff]   ;;  %v4235_v16 = vld [vmem:[#allocation5 + $0x304] ss:$20 sps:$4 sm:$0xff]   ;;  %v4233_v18 = vld [vmem:[#allocation5 + $0x300] ss:$20 sps:$4 sm:$0xff]  }
  0x66   :  { %1682 = vmatprep.subr.bf16.mxu0 %v4156_v28  ;;  %1805 = vmatprep.subr.bf16.mxu1 %v4158_v29  ;;  %v4230_v17 = vld [vmem:[#allocation5 + $0x2f8] ss:$20 sps:$4 sm:$0xff]   ;;  %v4236_v21 = vld [vmem:[#allocation5 + $0x320] ss:$20 sps:$4 sm:$0xff]   ;;  %v4239_v22 = vld [vmem:[#allocation5 + $0x328] ss:$20 sps:$4 sm:$0xff]  }
  0x67   :  { %v4238_v19 = vld [vmem:[#allocation5 + $0x324] ss:$20 sps:$4 sm:$0xff]   ;;  %v4241_v20 = vld [vmem:[#allocation5 + $0x32c] ss:$20 sps:$4 sm:$0xff]   ;;  %v4247_v24 = vld [vmem:[#allocation5 + $0x354] ss:$20 sps:$4 sm:$0xff]  }
  0x68   :  { %v4244_v23 = vld [vmem:[#allocation5 + $0x34c] ss:$20 sps:$4 sm:$0xff]   ;;  %v4242_v25 = vld [vmem:[#allocation5 + $0x348] ss:$20 sps:$4 sm:$0xff]   ;;  %v4245_v26 = vld [vmem:[#allocation5 + $0x350] ss:$20 sps:$4 sm:$0xff]  }
  0x69   :  { %1683 = vmatpush1.bf16.msra.mxu0 %v4160_v30  ;;  %1806 = vmatpush1.bf16.msra.mxu1 %v4161_v31  ;;  %v4250_v27 = vld [vmem:[#allocation5 + $0x374] ss:$20 sps:$4 sm:$0xff]   ;;  %v4253_v28 = vld [vmem:[#allocation5 + $0x37c] ss:$20 sps:$4 sm:$0xff]   ;;  %s4819_s8 = smov [#allocation10]  }
  0x6a   :  { %1684 = vmatprep.subr.bf16.mxu0 %v4162_v32  ;;  %1807 = vmatprep.subr.bf16.mxu1 %v4164_v33  ;;  %v4916_v29 = vld [vmem:[#allocation2 + $0x8] sm:$0xff]  ;;  %v4251_v32 = vld [vmem:[#allocation5 + $0x378] ss:$20 sps:$4 sm:$0xff]   ;;  %s3500_s9 = sshll.u32 %s4819_s8, 4  ;;  %s3501_s9 = int_to_ptr.vmem [resolvable:$true] %s3500_s9 }
  0x6b   :  { %v4920_v30 = vcombine.high %v4916_v29, %v4916_v29  ;;  %v4248_v31 = vld [vmem:[#allocation5 + $0x370] ss:$20 sps:$4 sm:$0xff]   ;;  %s4776_s10 = scalar_lea.vmem %s3501_s9, 256  ;;  %p4781_p5 = scmp.lt.s32.totalorder %s3501_s9, %s3501_s9 }
  0x6c   :  { %v4256_v33 = vld [vmem:[#allocation5 + $0x39c] ss:$20 sps:$4 sm:$0xff]   ;;  %p4777_p4 = scmp.ne.s32.totalorder %s3501_s9, %s4776_s10  ;;  %p4782_p6 = scmp.lt.s32.totalorder %s4776_s10, %s4776_s10 }
  0x6d   :  { %1685 = vmatpush1.bf16.msra.mxu0 %v4166_v34  ;;  %1808 = vmatpush1.bf16.msra.mxu1 %v4167_v35  ;;  %v4259_v34 = vld [vmem:[#allocation5 + $0x3a4] ss:$20 sps:$4 sm:$0xff]   ;;  %v4277_v46 = vld [vmem:[#allocation5 + $0x41c] ss:$20 sps:$4 sm:$0xff]  }
  0x6e   :  { %1686 = vmatprep.subr.bf16.mxu0 %v4168_v36  ;;  %1809 = vmatprep.subr.bf16.mxu1 %v4170_v37  ;;  %v4254_v35 = vld [vmem:[#allocation5 + $0x398] ss:$20 sps:$4 sm:$0xff]   ;;  %v4257_v36 = vld [vmem:[#allocation5 + $0x3a0] ss:$20 sps:$4 sm:$0xff]   ;;  %p4783_p7 = por %p4782_p6, %p4781_p5 }
  0x6f   :  { %v4262_v37 = vld [vmem:[#allocation5 + $0x3c4] ss:$20 sps:$4 sm:$0xff]  }
  0x70   :  { %p4784_p8 = pnand %p4783_p7, %p4777_p4 }
  0x71   :  { %1687 = vmatpush1.bf16.msra.mxu0 %v4172_v38  ;;  %1810 = vmatpush1.bf16.msra.mxu1 %v4173_v39  ;;  %v4265_v38 = vld [vmem:[#allocation5 + $0x3cc] ss:$20 sps:$4 sm:$0xff]  }
  0x72   :  { %1688 = vmatprep.subr.bf16.mxu0 %v4174_v40  ;;  %1811 = vmatprep.subr.bf16.mxu1 %v4176_v41  ;;  %v4260_v39 = vld [vmem:[#allocation5 + $0x3c0] ss:$20 sps:$4 sm:$0xff]   ;;  %v4263_v40 = vld [vmem:[#allocation5 + $0x3c8] ss:$20 sps:$4 sm:$0xff]  }
  0x73   :  { %v4268_v41 = vld [vmem:[#allocation5 + $0x3ec] ss:$20 sps:$4 sm:$0xff]  }
  0x75   :  { %1689 = vmatpush1.bf16.msra.mxu0 %v4178_v42  ;;  %1812 = vmatpush1.bf16.msra.mxu1 %v4179_v43  ;;  %v4271_v42 = vld [vmem:[#allocation5 + $0x3f4] ss:$20 sps:$4 sm:$0xff]  }
  0x76   :  { %1690 = vmatprep.subr.bf16.mxu0 %v4180_v44  ;;  %1813 = vmatprep.subr.bf16.mxu1 %v4182_v45  ;;  %v4266_v43 = vld [vmem:[#allocation5 + $0x3e8] ss:$20 sps:$4 sm:$0xff]   ;;  %v4269_v44 = vld [vmem:[#allocation5 + $0x3f0] ss:$20 sps:$4 sm:$0xff]  }
  0x77   :  { %v4274_v45 = vld [vmem:[#allocation5 + $0x414] ss:$20 sps:$4 sm:$0xff]  }
  0x79   :  { %1691 = vmatpush1.bf16.msra.mxu0 %v4184_v47  ;;  %1814 = vmatpush1.bf16.msra.mxu1 %v4185_v49  ;;  %v4272_v47 = vld [vmem:[#allocation5 + $0x410] ss:$20 sps:$4 sm:$0xff]   ;;  %v4275_v49 = vld [vmem:[#allocation5 + $0x418] ss:$20 sps:$4 sm:$0xff]  }
  0x7a   :  { %1692 = vmatprep.subr.bf16.mxu0 %v4186_v50  ;;  %1815 = vmatprep.subr.bf16.mxu1 %v4188_v51  ;;  %v4280_v50 = vld [vmem:[#allocation5 + $0x43c] ss:$20 sps:$4 sm:$0xff]   ;;  %v4283_v51 = vld [vmem:[#allocation5 + $0x444] ss:$20 sps:$4 sm:$0xff]  }
  0x7d   :  { %1693 = vmatpush1.bf16.msra.mxu0 %v4190_v52  ;;  %1816 = vmatpush1.bf16.msra.mxu1 %v4191_v53  ;;  %v4278_v52 = vld [vmem:[#allocation5 + $0x438] ss:$20 sps:$4 sm:$0xff]   ;;  %v4281_v53 = vld [vmem:[#allocation5 + $0x440] ss:$20 sps:$4 sm:$0xff]  }
  0x7e   :  { %1694 = vmatprep.subr.bf16.mxu0 %v4192_v54  ;;  %1817 = vmatprep.subr.bf16.mxu1 %v4194_v55  ;;  %v4286_v54 = vld [vmem:[#allocation5 + $0x464] ss:$20 sps:$4 sm:$0xff]   ;;  %v4289_v55 = vld [vmem:[#allocation5 + $0x46c] ss:$20 sps:$4 sm:$0xff]  }
  0x81   :  { %1695 = vmatpush1.bf16.msra.mxu0 %v4196_v56  ;;  %1818 = vmatpush1.bf16.msra.mxu1 %v4197_v57  ;;  %v4284_v56 = vld [vmem:[#allocation5 + $0x460] ss:$20 sps:$4 sm:$0xff]   ;;  %v4287_v57 = vld [vmem:[#allocation5 + $0x468] ss:$20 sps:$4 sm:$0xff]  }
  0x82   :  { %1696 = vmatprep.subr.bf16.mxu0 %v4198_v58  ;;  %1819 = vmatprep.subr.bf16.mxu1 %v4200_v59  ;;  %v4292_v58 = vld [vmem:[#allocation5 + $0x48c] ss:$20 sps:$4 sm:$0xff]   ;;  %v4295_v59 = vld [vmem:[#allocation5 + $0x494] ss:$20 sps:$4 sm:$0xff]  }
  0x85   :  { %1697 = vmatpush1.bf16.msra.mxu0 %v4202_v60  ;;  %1820 = vmatpush1.bf16.msra.mxu1 %v4203_v61  ;;  %v4290_v60 = vld [vmem:[#allocation5 + $0x488] ss:$20 sps:$4 sm:$0xff]   ;;  %v4293_v61 = vld [vmem:[#allocation5 + $0x490] ss:$20 sps:$4 sm:$0xff]  }
  0x86   :  { %1698 = vmatprep.subr.bf16.mxu0 %v4204_v62  ;;  %1821 = vmatprep.subr.bf16.mxu1 %v4206_v63  ;;  %v4298_v62 = vld [vmem:[#allocation5 + $0x4b4] ss:$20 sps:$4 sm:$0xff]   ;;  %v4301_v63 = vld [vmem:[#allocation5 + $0x4bc] ss:$20 sps:$4 sm:$0xff]  }
  0x89   :  { %1699 = vmatpush1.bf16.msra.mxu0 %v4208_v0  ;;  %1822 = vmatpush1.bf16.msra.mxu1 %v4209_v1  ;;  %v4296_v0 = vld [vmem:[#allocation5 + $0x4b0] ss:$20 sps:$4 sm:$0xff]   ;;  %v4299_v1 = vld [vmem:[#allocation5 + $0x4b8] ss:$20 sps:$4 sm:$0xff]  }
  0x8a   :  { %1709 = vmatprep.subr.bf16.mxu0 %v4213_v2  ;;  %1832 = vmatprep.subr.bf16.mxu1 %v4216_v3  ;;  %v4304_v2 = vld [vmem:[#allocation5 + $0x4dc] ss:$20 sps:$4 sm:$0xff]   ;;  %v4307_v3 = vld [vmem:[#allocation5 + $0x4e4] ss:$20 sps:$4 sm:$0xff]  }
  0x8c   :  { %1701 = vmatmul.mubr.bf16.vlgmr.msra.gmra.mrb[0].mxu0 %v4912_v5  ;;  %1824 = vmatmul.mubr.bf16.vlgmr.msra.gmra.mrb[0].mxu1 %v4912_v5 }
  0x8d   :  { %1710 = vmatpush1.bf16.msra.mxu0 %v4211_v4  ;;  %1833 = vmatpush1.bf16.msra.mxu1 %v4214_v6  ;;  %v4302_v4 = vld [vmem:[#allocation5 + $0x4d8] ss:$20 sps:$4 sm:$0xff]   ;;  %v4305_v6 = vld [vmem:[#allocation5 + $0x4e0] ss:$20 sps:$4 sm:$0xff]  }
  0x8e   :  { %1711 = vmatprep.subr.bf16.mxu0 %v4220_v7  ;;  %1834 = vmatprep.subr.bf16.mxu1 %v4223_v8  ;;  %v4312_v7 = vld [vmem:[#allocation5 + $0x504] ss:$20 sps:$4 sm:$0xff]   ;;  %v4315_v8 = vld [vmem:[#allocation5 + $0x50c] ss:$20 sps:$4 sm:$0xff]  }
  0x8f   :  { %1741 = vmatprep.mubr.bf16.mxu0 %v4920_v30  ;;  %1864 = vmatprep.mubr.bf16.mxu1 %v4920_v30 }
  0x91   :  { %1712 = vmatpush1.bf16.msra.mxu0 %v4218_v9  ;;  %1835 = vmatpush1.bf16.msra.mxu1 %v4221_v10  ;;  %v4926_v9 = vcombine.low %v4916_v29, %v4916_v29  ;;  %v4310_v10 = vld [vmem:[#allocation5 + $0x500] ss:$20 sps:$4 sm:$0xff]   ;;  %v4337_v29 = vld [vmem:[#allocation5 + $0x5a8] ss:$20 sps:$4 sm:$0xff]  }
  0x92   :  { %1713 = vmatprep.subr.bf16.mxu0 %v4226_v11  ;;  %1836 = vmatprep.subr.bf16.mxu1 %v4229_v12  ;;  %v4313_v11 = vld [vmem:[#allocation5 + $0x508] ss:$20 sps:$4 sm:$0xff]   ;;  %v4318_v12 = vld [vmem:[#allocation5 + $0x52c] ss:$20 sps:$4 sm:$0xff]  }
  0x95   :  { %1714 = vmatpush1.bf16.msra.mxu0 %v4224_v13  ;;  %1837 = vmatpush1.bf16.msra.mxu1 %v4227_v14  ;;  %v4928_v13 = vld [vmem:[#allocation2 + $0x10] sm:$0xff]  ;;  %v4321_v14 = vld [vmem:[#allocation5 + $0x534] ss:$20 sps:$4 sm:$0xff]  }
  0x96   :  { %1715 = vmatprep.subr.bf16.mxu0 %v4232_v15  ;;  %1838 = vmatprep.subr.bf16.mxu1 %v4235_v16  ;;  %v4316_v15 = vld [vmem:[#allocation5 + $0x528] ss:$20 sps:$4 sm:$0xff]   ;;  %v4932_v16 = vcombine.high %v4928_v13, %v4928_v13 }
  0x99   :  { %1716 = vmatpush1.bf16.msra.mxu0 %v4230_v17  ;;  %1839 = vmatpush1.bf16.msra.mxu1 %v4233_v18  ;;  %v4319_v17 = vld [vmem:[#allocation5 + $0x530] ss:$20 sps:$4 sm:$0xff]   ;;  %v4324_v18 = vld [vmem:[#allocation5 + $0x554] ss:$20 sps:$4 sm:$0xff]  }
  0x9a   :  { %1717 = vmatprep.subr.bf16.mxu0 %v4238_v19  ;;  %1840 = vmatprep.subr.bf16.mxu1 %v4241_v20  ;;  %v4327_v19 = vld [vmem:[#allocation5 + $0x55c] ss:$20 sps:$4 sm:$0xff]  }
  0x9b   :  { %v4322_v20 = vld [vmem:[#allocation5 + $0x550] ss:$20 sps:$4 sm:$0xff]  }
  0x9d   :  { %1718 = vmatpush1.bf16.msra.mxu0 %v4236_v21  ;;  %1841 = vmatpush1.bf16.msra.mxu1 %v4239_v22  ;;  %v4325_v21 = vld [vmem:[#allocation5 + $0x558] ss:$20 sps:$4 sm:$0xff]   ;;  %v4330_v22 = vld [vmem:[#allocation5 + $0x57c] ss:$20 sps:$4 sm:$0xff]  }
  0x9e   :  { %1719 = vmatprep.subr.bf16.mxu0 %v4244_v23  ;;  %1842 = vmatprep.subr.bf16.mxu1 %v4247_v24  ;;  %v4333_v23 = vld [vmem:[#allocation5 + $0x584] ss:$20 sps:$4 sm:$0xff]  }
  0x9f   :  { %v4328_v24 = vld [vmem:[#allocation5 + $0x578] ss:$20 sps:$4 sm:$0xff]  }
  0xa1   :  { %1720 = vmatpush1.bf16.msra.mxu0 %v4242_v25  ;;  %1843 = vmatpush1.bf16.msra.mxu1 %v4245_v26  ;;  %v4331_v25 = vld [vmem:[#allocation5 + $0x580] ss:$20 sps:$4 sm:$0xff]   ;;  %v4336_v26 = vld [vmem:[#allocation5 + $0x5a4] ss:$20 sps:$4 sm:$0xff]  }
  0xa2   :  { %1721 = vmatprep.subr.bf16.mxu0 %v4250_v27  ;;  %1844 = vmatprep.subr.bf16.mxu1 %v4253_v28  ;;  %v4339_v27 = vld [vmem:[#allocation5 + $0x5ac] ss:$20 sps:$4 sm:$0xff]  }
  0xa3   :  { %v4334_v28 = vld [vmem:[#allocation5 + $0x5a0] ss:$20 sps:$4 sm:$0xff]  }
  0xa5   :  { %1722 = vmatpush1.bf16.msra.mxu0 %v4248_v31  ;;  %1845 = vmatpush1.bf16.msra.mxu1 %v4251_v32  ;;  %v4342_v31 = vld [vmem:[#allocation5 + $0x5cc] ss:$20 sps:$4 sm:$0xff]   ;;  %v4345_v32 = vld [vmem:[#allocation5 + $0x5d4] ss:$20 sps:$4 sm:$0xff]  }
  0xa6   :  { %1723 = vmatprep.subr.bf16.mxu0 %v4256_v33  ;;  %1846 = vmatprep.subr.bf16.mxu1 %v4259_v34  ;;  %v4340_v33 = vld [vmem:[#allocation5 + $0x5c8] ss:$20 sps:$4 sm:$0xff]   ;;  %v4343_v34 = vld [vmem:[#allocation5 + $0x5d0] ss:$20 sps:$4 sm:$0xff]  }
  0xa9   :  { %1724 = vmatpush1.bf16.msra.mxu0 %v4254_v35  ;;  %1847 = vmatpush1.bf16.msra.mxu1 %v4257_v36  ;;  %v4348_v35 = vld [vmem:[#allocation5 + $0x5f4] ss:$20 sps:$4 sm:$0xff]   ;;  %v4351_v36 = vld [vmem:[#allocation5 + $0x5fc] ss:$20 sps:$4 sm:$0xff]  }
  0xaa   :  { %1725 = vmatprep.subr.bf16.mxu0 %v4262_v37  ;;  %1848 = vmatprep.subr.bf16.mxu1 %v4265_v38  ;;  %v4346_v37 = vld [vmem:[#allocation5 + $0x5f0] ss:$20 sps:$4 sm:$0xff]   ;;  %v4349_v38 = vld [vmem:[#allocation5 + $0x5f8] ss:$20 sps:$4 sm:$0xff]  }
  0xad   :  { %1726 = vmatpush1.bf16.msra.mxu0 %v4260_v39  ;;  %1849 = vmatpush1.bf16.msra.mxu1 %v4263_v40  ;;  %v4354_v39 = vld [vmem:[#allocation5 + $0x61c] ss:$20 sps:$4 sm:$0xff]   ;;  %v4357_v40 = vld [vmem:[#allocation5 + $0x624] ss:$20 sps:$4 sm:$0xff]  }
  0xae   :  { %1727 = vmatprep.subr.bf16.mxu0 %v4268_v41  ;;  %1850 = vmatprep.subr.bf16.mxu1 %v4271_v42  ;;  %v4352_v41 = vld [vmem:[#allocation5 + $0x618] ss:$20 sps:$4 sm:$0xff]   ;;  %v4355_v42 = vld [vmem:[#allocation5 + $0x620] ss:$20 sps:$4 sm:$0xff]  }
  0xb1   :  { %1728 = vmatpush1.bf16.msra.mxu0 %v4266_v43  ;;  %1851 = vmatpush1.bf16.msra.mxu1 %v4269_v44  ;;  %v4360_v43 = vld [vmem:[#allocation5 + $0x644] ss:$20 sps:$4 sm:$0xff]   ;;  %v4363_v44 = vld [vmem:[#allocation5 + $0x64c] ss:$20 sps:$4 sm:$0xff]  }
  0xb2   :  { %1729 = vmatprep.subr.bf16.mxu0 %v4274_v45  ;;  %1852 = vmatprep.subr.bf16.mxu1 %v4277_v46  ;;  %v4358_v45 = vld [vmem:[#allocation5 + $0x640] ss:$20 sps:$4 sm:$0xff]   ;;  %v4361_v46 = vld [vmem:[#allocation5 + $0x648] ss:$20 sps:$4 sm:$0xff]  }
  0xb5   :  { %1730 = vmatpush1.bf16.msra.mxu0 %v4272_v47  ;;  %1853 = vmatpush1.bf16.msra.mxu1 %v4275_v49  ;;  %v4366_v47 = vld [vmem:[#allocation5 + $0x66c] ss:$20 sps:$4 sm:$0xff]   ;;  %v4369_v49 = vld [vmem:[#allocation5 + $0x674] ss:$20 sps:$4 sm:$0xff]  }
  0xb6   :  { %1731 = vmatprep.subr.bf16.mxu0 %v4280_v50  ;;  %1854 = vmatprep.subr.bf16.mxu1 %v4283_v51  ;;  %v4364_v50 = vld [vmem:[#allocation5 + $0x668] ss:$20 sps:$4 sm:$0xff]   ;;  %v4367_v51 = vld [vmem:[#allocation5 + $0x670] ss:$20 sps:$4 sm:$0xff]  }
  0xb9   :  { %1732 = vmatpush1.bf16.msra.mxu0 %v4278_v52  ;;  %1855 = vmatpush1.bf16.msra.mxu1 %v4281_v53  ;;  %v4372_v52 = vld [vmem:[#allocation5 + $0x694] ss:$20 sps:$4 sm:$0xff]   ;;  %v4375_v53 = vld [vmem:[#allocation5 + $0x69c] ss:$20 sps:$4 sm:$0xff]  }
  0xba   :  { %1733 = vmatprep.subr.bf16.mxu0 %v4286_v54  ;;  %1856 = vmatprep.subr.bf16.mxu1 %v4289_v55  ;;  %v4370_v54 = vld [vmem:[#allocation5 + $0x690] ss:$20 sps:$4 sm:$0xff]   ;;  %v4373_v55 = vld [vmem:[#allocation5 + $0x698] ss:$20 sps:$4 sm:$0xff]  }
  0xbd   :  { %1734 = vmatpush1.bf16.msra.mxu0 %v4284_v56  ;;  %1857 = vmatpush1.bf16.msra.mxu1 %v4287_v57  ;;  %v4378_v56 = vld [vmem:[#allocation5 + $0x6bc] ss:$20 sps:$4 sm:$0xff]   ;;  %v4381_v57 = vld [vmem:[#allocation5 + $0x6c4] ss:$20 sps:$4 sm:$0xff]  }
  0xbe   :  { %1735 = vmatprep.subr.bf16.mxu0 %v4292_v58  ;;  %1858 = vmatprep.subr.bf16.mxu1 %v4295_v59  ;;  %v4376_v58 = vld [vmem:[#allocation5 + $0x6b8] ss:$20 sps:$4 sm:$0xff]   ;;  %v4379_v59 = vld [vmem:[#allocation5 + $0x6c0] ss:$20 sps:$4 sm:$0xff]  }
  0xc1   :  { %1736 = vmatpush1.bf16.msra.mxu0 %v4290_v60  ;;  %1859 = vmatpush1.bf16.msra.mxu1 %v4293_v61  ;;  %v4384_v60 = vld [vmem:[#allocation5 + $0x6e4] ss:$20 sps:$4 sm:$0xff]   ;;  %v4387_v61 = vld [vmem:[#allocation5 + $0x6ec] ss:$20 sps:$4 sm:$0xff]  }
  0xc2   :  { %1737 = vmatprep.subr.bf16.mxu0 %v4298_v62  ;;  %1860 = vmatprep.subr.bf16.mxu1 %v4301_v63  ;;  %v4382_v62 = vld [vmem:[#allocation5 + $0x6e0] ss:$20 sps:$4 sm:$0xff]   ;;  %v4385_v63 = vld [vmem:[#allocation5 + $0x6e8] ss:$20 sps:$4 sm:$0xff]  }
  0xc5   :  { %1738 = vmatpush1.bf16.msra.mxu0 %v4296_v0  ;;  %1861 = vmatpush1.bf16.msra.mxu1 %v4299_v1  ;;  %v4390_v0 = vld [vmem:[#allocation5 + $0x70c] ss:$20 sps:$4 sm:$0xff]   ;;  %v4393_v1 = vld [vmem:[#allocation5 + $0x714] ss:$20 sps:$4 sm:$0xff]  }
  0xc6   :  { %1739 = vmatprep.subr.bf16.mxu0 %v4304_v2  ;;  %1862 = vmatprep.subr.bf16.mxu1 %v4307_v3  ;;  %v4388_v2 = vld [vmem:[#allocation5 + $0x708] ss:$20 sps:$4 sm:$0xff]   ;;  %v4391_v3 = vld [vmem:[#allocation5 + $0x710] ss:$20 sps:$4 sm:$0xff]  }
  0xc9   :  { %1740 = vmatpush1.bf16.msra.mxu0 %v4302_v4  ;;  %1863 = vmatpush1.bf16.msra.mxu1 %v4305_v6  ;;  %v4396_v4 = vld [vmem:[#allocation5 + $0x734] ss:$20 sps:$4 sm:$0xff]   ;;  %v4399_v6 = vld [vmem:[#allocation5 + $0x73c] ss:$20 sps:$4 sm:$0xff]  }
  0xca   :  { %1750 = vmatprep.subr.bf16.mxu0 %v4312_v7  ;;  %1873 = vmatprep.subr.bf16.mxu1 %v4315_v8  ;;  %v4394_v7 = vld [vmem:[#allocation5 + $0x730] ss:$20 sps:$4 sm:$0xff]   ;;  %v4397_v8 = vld [vmem:[#allocation5 + $0x738] ss:$20 sps:$4 sm:$0xff]  }
  0xcc   :  { %1742 = vmatmul.mubr.bf16.vlgmr.msra.gmra.mrb[0].mxu0 %v4926_v9  ;;  %1865 = vmatmul.mubr.bf16.vlgmr.msra.gmra.mrb[0].mxu1 %v4926_v9 }
  0xcd   :  { %1751 = vmatpush1.bf16.msra.mxu0 %v4310_v10  ;;  %1874 = vmatpush1.bf16.msra.mxu1 %v4313_v11  ;;  %v4402_v10 = vld [vmem:[#allocation5 + $0x75c] ss:$20 sps:$4 sm:$0xff]   ;;  %v4405_v11 = vld [vmem:[#allocation5 + $0x764] ss:$20 sps:$4 sm:$0xff]  }
  0xce   :  { %1752 = vmatprep.subr.bf16.mxu0 %v4318_v12  ;;  %1875 = vmatprep.subr.bf16.mxu1 %v4321_v14  ;;  %v4400_v12 = vld [vmem:[#allocation5 + $0x758] ss:$20 sps:$4 sm:$0xff]   ;;  %v4403_v14 = vld [vmem:[#allocation5 + $0x760] ss:$20 sps:$4 sm:$0xff]  }
  0xcf   :  { %1782 = vmatprep.mubr.bf16.mxu0 %v4932_v16  ;;  %1905 = vmatprep.mubr.bf16.mxu1 %v4932_v16 }
  0xd1   :  { %1753 = vmatpush1.bf16.msra.mxu0 %v4316_v15  ;;  %1876 = vmatpush1.bf16.msra.mxu1 %v4319_v17  ;;  %v4408_v15 = vld [vmem:[#allocation5 + $0x150] ss:$20 sps:$4 sm:$0xff]  }
  0xd2   :  { %1754 = vmatprep.subr.bf16.mxu0 %v4324_v18  ;;  %1877 = vmatprep.subr.bf16.mxu1 %v4327_v19  ;;  %v4426_v17 = vld [vmem:[#allocation5 + $0x650] ss:$20 sps:$4 sm:$0xff]   ;;  %v4940_v18 = vcombine.low %v4928_v13, %v4928_v13  ;;  %v4431_v13 = vld [vmem:[#allocation5 + $0x538] ss:$20 sps:$4 sm:$0xff]  }
  0xd3   :  { %v4409_v19 = vld [vmem:[#allocation5 + $0x10] ss:$20 sps:$4 sm:$0xff]  }
  0xd5   :  { %1755 = vmatpush1.bf16.msra.mxu0 %v4322_v20  ;;  %1878 = vmatpush1.bf16.msra.mxu1 %v4325_v21  ;;  %v4410_v20 = vld [vmem:[#allocation5 + $0x178] ss:$20 sps:$4 sm:$0xff]   ;;  %v4427_v21 = vld [vmem:[#allocation5 + $0x510] ss:$20 sps:$4 sm:$0xff]  }
  0xd6   :  { %1756 = vmatprep.subr.bf16.mxu0 %v4330_v22  ;;  %1879 = vmatprep.subr.bf16.mxu1 %v4333_v23  ;;  %v4430_v22 = vld [vmem:[#allocation5 + $0x678] ss:$20 sps:$4 sm:$0xff]  }
  0xd7   :  { %v4411_v23 = vld [vmem:[#allocation5 + $0x38] ss:$20 sps:$4 sm:$0xff]  }
  0xd9   :  { %1757 = vmatpush1.bf16.msra.mxu0 %v4328_v24  ;;  %1880 = vmatpush1.bf16.msra.mxu1 %v4331_v25  ;;  %v4412_v24 = vld [vmem:[#allocation5 + $0x1a0] ss:$20 sps:$4 sm:$0xff]  }
  0xda   :  { %1758 = vmatprep.subr.bf16.mxu0 %v4336_v26  ;;  %1881 = vmatprep.subr.bf16.mxu1 %v4339_v27  ;;  %v4434_v25 = vld [vmem:[#allocation5 + $0x6a0] ss:$20 sps:$4 sm:$0xff]   ;;  %v4414_v27 = vld [vmem:[#allocation5 + $0x1c8] ss:$20 sps:$4 sm:$0xff]  }
  0xdb   :  { %v4413_v26 = vld [vmem:[#allocation5 + $0x60] ss:$20 sps:$4 sm:$0xff]  }
  0xdd   :  { %1759 = vmatpush1.bf16.msra.mxu0 %v4334_v28  ;;  %1882 = vmatpush1.bf16.msra.mxu1 %v4337_v29  ;;  %v4435_v28 = vld [vmem:[#allocation5 + $0x560] ss:$20 sps:$4 sm:$0xff]   ;;  %v4438_v29 = vld [vmem:[#allocation5 + $0x6c8] ss:$20 sps:$4 sm:$0xff]  }
  0xde   :  { %1760 = vmatprep.subr.bf16.mxu0 %v4342_v31  ;;  %1883 = vmatprep.subr.bf16.mxu1 %v4345_v32  ;;  %v4415_v31 = vld [vmem:[#allocation5 + $0x88] ss:$20 sps:$4 sm:$0xff]   ;;  %v4416_v32 = vld [vmem:[#allocation5 + $0x1f0] ss:$20 sps:$4 sm:$0xff]  }
  0xe1   :  { %1761 = vmatpush1.bf16.msra.mxu0 %v4340_v33  ;;  %1884 = vmatpush1.bf16.msra.mxu1 %v4343_v34  ;;  %v4417_v33 = vld [vmem:[#allocation5 + $0xb0] ss:$20 sps:$4 sm:$0xff]  }
  0xe2   :  { %1762 = vmatprep.subr.bf16.mxu0 %v4348_v35  ;;  %1885 = vmatprep.subr.bf16.mxu1 %v4351_v36  ;;  %v4442_v34 = vld [vmem:[#allocation5 + $0x6f0] ss:$20 sps:$4 sm:$0xff]   ;;  %v4418_v35 = vld [vmem:[#allocation5 + $0x218] ss:$20 sps:$4 sm:$0xff]  }
  0xe3   :  { %v4443_v36 = vld [vmem:[#allocation5 + $0x5b0] ss:$20 sps:$4 sm:$0xff]  }
  0xe5   :  { %1763 = vmatpush1.bf16.msra.mxu0 %v4346_v37  ;;  %1886 = vmatpush1.bf16.msra.mxu1 %v4349_v38  ;;  %v4419_v37 = vld [vmem:[#allocation5 + $0xd8] ss:$20 sps:$4 sm:$0xff]   ;;  %v4420_v38 = vld [vmem:[#allocation5 + $0x240] ss:$20 sps:$4 sm:$0xff]  }
  0xe6   :  { %1764 = vmatprep.subr.bf16.mxu0 %v4354_v39  ;;  %1887 = vmatprep.subr.bf16.mxu1 %v4357_v40  ;;  %v4447_v39 = vld [vmem:[#allocation5 + $0x5d8] ss:$20 sps:$4 sm:$0xff]   ;;  %v4450_v40 = vld [vmem:[#allocation5 + $0x740] ss:$20 sps:$4 sm:$0xff]  }
  0xe9   :  { %1765 = vmatpush1.bf16.msra.mxu0 %v4352_v41  ;;  %1888 = vmatpush1.bf16.msra.mxu1 %v4355_v42  ;;  %v4421_v41 = vld [vmem:[#allocation5 + $0x100] ss:$20 sps:$4 sm:$0xff]   ;;  %v4422_v42 = vld [vmem:[#allocation5 + $0x268] ss:$20 sps:$4 sm:$0xff]  }
  0xea   :  { %1766 = vmatprep.subr.bf16.mxu0 %v4360_v43  ;;  %1889 = vmatprep.subr.bf16.mxu1 %v4363_v44  ;;  %v4451_v43 = vld [vmem:[#allocation5 + $0x600] ss:$20 sps:$4 sm:$0xff]   ;;  %v4454_v44 = vld [vmem:[#allocation5 + $0x768] ss:$20 sps:$4 sm:$0xff]  }
  0xed   :  { %1767 = vmatpush1.bf16.msra.mxu0 %v4358_v45  ;;  %1890 = vmatpush1.bf16.msra.mxu1 %v4361_v46  ;;  %v4423_v45 = vld [vmem:[#allocation5 + $0x128] ss:$20 sps:$4 sm:$0xff]   ;;  %v4424_v46 = vld [vmem:[#allocation5 + $0x3d0] ss:$20 sps:$4 sm:$0xff]  }
  0xee   :  { %1768 = vmatprep.subr.bf16.mxu0 %v4366_v47  ;;  %1891 = vmatprep.subr.bf16.mxu1 %v4369_v49  ;;  %v4455_v47 = vld [vmem:[#allocation5 + $0x628] ss:$20 sps:$4 sm:$0xff]  }
  0xef   :  { %v4483_v49 = vld [vmem:[#allocation7 + $0xc8] ss:$12 sps:$4 sm:$0xff]  }
  0xf1   :  { %1769 = vmatpush1.bf16.msra.mxu0 %v4364_v50  ;;  %1892 = vmatpush1.bf16.msra.mxu1 %v4367_v51  ;;  %v4425_v50 = vld [vmem:[#allocation5 + $0x290] ss:$20 sps:$4 sm:$0xff]   ;;  %v4428_v51 = vld [vmem:[#allocation5 + $0x3f8] ss:$20 sps:$4 sm:$0xff]  }
  0xf2   :  { %1770 = vmatprep.subr.bf16.mxu0 %v4372_v52  ;;  %1893 = vmatprep.subr.bf16.mxu1 %v4375_v53  ;;  %v4484_v52 = vld [vmem:[#allocation7 + $0x8] ss:$12 sps:$4 sm:$0xff]   ;;  %v4488_v53 = vld [vmem:[#allocation7 + $0xe0] ss:$12 sps:$4 sm:$0xff]  }
  0xf5   :  { %1771 = vmatpush1.bf16.msra.mxu0 %v4370_v54  ;;  %1894 = vmatpush1.bf16.msra.mxu1 %v4373_v55  ;;  %v4429_v54 = vld [vmem:[#allocation5 + $0x2b8] ss:$20 sps:$4 sm:$0xff]   ;;  %v4432_v55 = vld [vmem:[#allocation5 + $0x420] ss:$20 sps:$4 sm:$0xff]  }
  0xf6   :  { %1772 = vmatprep.subr.bf16.mxu0 %v4378_v56  ;;  %1895 = vmatprep.subr.bf16.mxu1 %v4381_v57  ;;  %v4489_v56 = vld [vmem:[#allocation7 + $0x20] ss:$12 sps:$4 sm:$0xff]   ;;  %v4493_v57 = vld [vmem:[#allocation7 + $0xf8] ss:$12 sps:$4 sm:$0xff]  }
  0xf9   :  { %1773 = vmatpush1.bf16.msra.mxu0 %v4376_v58  ;;  %1896 = vmatpush1.bf16.msra.mxu1 %v4379_v59  ;;  %v4433_v58 = vld [vmem:[#allocation5 + $0x2e0] ss:$20 sps:$4 sm:$0xff]   ;;  %v4436_v59 = vld [vmem:[#allocation5 + $0x448] ss:$20 sps:$4 sm:$0xff]  }
  0xfa   :  { %1774 = vmatprep.subr.bf16.mxu0 %v4384_v60  ;;  %1897 = vmatprep.subr.bf16.mxu1 %v4387_v61  ;;  %v4494_v60 = vld [vmem:[#allocation7 + $0x38] ss:$12 sps:$4 sm:$0xff]   ;;  %v4498_v61 = vld [vmem:[#allocation7 + $0x110] ss:$12 sps:$4 sm:$0xff]  }
  0xfd   :  { %1775 = vmatpush1.bf16.msra.mxu0 %v4382_v62  ;;  %1898 = vmatpush1.bf16.msra.mxu1 %v4385_v63  ;;  %v4437_v62 = vld [vmem:[#allocation5 + $0x308] ss:$20 sps:$4 sm:$0xff]  }
  0xfe   :  { %1776 = vmatprep.subr.bf16.mxu0 %v4390_v0  ;;  %1899 = vmatprep.subr.bf16.mxu1 %v4393_v1  ;;  %v4499_v63 = vld [vmem:[#allocation7 + $0x50] ss:$12 sps:$4 sm:$0xff]   ;;  %v4444_v1 = vld [vmem:[#allocation5 + $0x498] ss:$20 sps:$4 sm:$0xff]  }
  0xff   :  { %v4441_v0 = vld [vmem:[#allocation5 + $0x330] ss:$20 sps:$4 sm:$0xff]  }
 0x101   :  { %1777 = vmatpush1.bf16.msra.mxu0 %v4388_v2  ;;  %1900 = vmatpush1.bf16.msra.mxu1 %v4391_v3  ;;  %v4504_v2 = vld [vmem:[#allocation7 + $0x68] ss:$12 sps:$4 sm:$0xff]   ;;  %v4508_v3 = vld [vmem:[#allocation7 + $0x140] ss:$12 sps:$4 sm:$0xff]  }
 0x102   :  { %1778 = vmatprep.subr.bf16.mxu0 %v4396_v4  ;;  %1901 = vmatprep.subr.bf16.mxu1 %v4399_v6  ;;  %v4445_v4 = vld [vmem:[#allocation5 + $0x358] ss:$20 sps:$4 sm:$0xff]   ;;  %v4448_v6 = vld [vmem:[#allocation5 + $0x4c0] ss:$20 sps:$4 sm:$0xff]  }
 0x105   :  { %1779 = vmatpush1.bf16.msra.mxu0 %v4394_v7  ;;  %1902 = vmatpush1.bf16.msra.mxu1 %v4397_v8  ;;  %v4509_v7 = vld [vmem:[#allocation7 + $0x80] ss:$12 sps:$4 sm:$0xff]  }
 0x106   :  { %1780 = vmatprep.subr.bf16.mxu0 %v4402_v10  ;;  %1903 = vmatprep.subr.bf16.mxu1 %v4405_v11  ;;  %v4449_v8 = vld [vmem:[#allocation5 + $0x380] ss:$20 sps:$4 sm:$0xff]   ;;  %v4452_v10 = vld [vmem:[#allocation5 + $0x4e8] ss:$20 sps:$4 sm:$0xff]  }
 0x107   :  { %v4453_v11 = vld [vmem:[#allocation5 + $0x3a8] ss:$20 sps:$4 sm:$0xff]  }
 0x109   :  { %1781 = vmatpush1.bf16.msra.mxu0 %v4400_v12  ;;  %1904 = vmatpush1.bf16.msra.mxu1 %v4403_v14  ;;  %v4458_v12 = vld [vmem:[#allocation7 + $0x4] ss:$12 sps:$4 sm:$0xff]   ;;  %v4456_v14 = vld [vmem:[#allocation7] ss:$12 sps:$4 sm:$0xff]  }
 0x10a   :  { %3925 = vmatprep.subr.bf16.mxu1 %v4408_v15  ;;  %3969 = vmatprep.subr.bf16.mxu0 %v4426_v17  ;;  %v4461_v15 = vld [vmem:[#allocation7 + $0x1c] ss:$12 sps:$4 sm:$0xff]   ;;  %v4459_v17 = vld [vmem:[#allocation7 + $0x18] ss:$12 sps:$4 sm:$0xff]  }
 0x10c   :  { %1783 = vmatmul.mubr.bf16.vlgmr.msra.gmra.mrb[0].mxu0 %v4940_v18  ;;  %1906 = vmatmul.mubr.bf16.vlgmr.msra.gmra.mrb[0].mxu1 %v4940_v18 }
 0x10d   :  { %3926 = vmatpush3.bf16.msra.mxu1 %v4409_v19  ;;  %1946 = vmatprep.mubr.bf16.mxu1 %v4908_v48  ;;  %v4439_v48 = vld [vmem:[#allocation5 + $0x588] ss:$20 sps:$4 sm:$0xff]  }
 0x10e   :  { %3927 = vmatprep.subr.bf16.mxu1 %v4410_v20  ;;  %3970 = vmatpush3.bf16.msra.mxu0 %v4427_v21  ;;  %v4462_v19 = vld [vmem:[#allocation7 + $0x30] ss:$12 sps:$4 sm:$0xff]   ;;  %v4467_v20 = vld [vmem:[#allocation7 + $0x4c] ss:$12 sps:$4 sm:$0xff]   ;;  %v4465_v21 = vld [vmem:[#allocation7 + $0x48] ss:$12 sps:$4 sm:$0xff]  }
 0x10f   :  { %3971 = vmatprep.subr.bf16.mxu0 %v4430_v22  ;;  %2026 = vmatprep.mubr.bf16.mxu0 %v4932_v16  ;;  %v4446_v16 = vld [vmem:[#allocation5 + $0x718] ss:$20 sps:$4 sm:$0xff]   ;;  %v4470_v22 = vld [vmem:[#allocation7 + $0x64] ss:$12 sps:$4 sm:$0xff]  }
 0x111   :  { %3928 = vmatpush3.bf16.msra.mxu1 %v4411_v23  ;;  %v4468_v23 = vld [vmem:[#allocation7 + $0x60] ss:$12 sps:$4 sm:$0xff]  }
 0x112   :  { %3929 = vmatprep.subr.bf16.mxu1 %v4412_v24  ;;  %3972 = vmatpush3.bf16.msra.mxu0 %v4431_v13  ;;  %v4473_v24 = vld [vmem:[#allocation7 + $0x7c] ss:$12 sps:$4 sm:$0xff]   ;;  %v4471_v13 = vld [vmem:[#allocation7 + $0x78] ss:$12 sps:$4 sm:$0xff]  }
 0x113   :  { %3973 = vmatprep.subr.bf16.mxu0 %v4434_v25  ;;  %v4513_v25 = vld [vmem:[#allocation7 + $0x158] ss:$12 sps:$4 sm:$0xff]  }
 0x115   :  { %3930 = vmatpush3.bf16.msra.mxu1 %v4413_v26  ;;  %v4514_v26 = vld [vmem:[#allocation7 + $0x98] ss:$12 sps:$4 sm:$0xff]  }
 0x116   :  { %3931 = vmatprep.subr.bf16.mxu1 %v4414_v27  ;;  %3974 = vmatpush3.bf16.msra.mxu0 %v4435_v28  ;;  %v4474_v27 = vld [vmem:[#allocation7 + $0x90] ss:$12 sps:$4 sm:$0xff]  }
 0x117   :  { %3975 = vmatprep.subr.bf16.mxu0 %v4438_v29  ;;  %v4518_v28 = vld [vmem:[#allocation7 + $0x170] ss:$12 sps:$4 sm:$0xff]   ;;  %v4479_v29 = vld [vmem:[#allocation7 + $0xac] ss:$12 sps:$4 sm:$0xff]  }
 0x119   :  { %3932 = vmatpush3.bf16.msra.mxu1 %v4415_v31  ;;  %v4519_v31 = vld [vmem:[#allocation7 + $0xb0] ss:$12 sps:$4 sm:$0xff]  }
 0x11a   :  { %3933 = vmatprep.subr.bf16.mxu1 %v4416_v32  ;;  %3976 = vmatpush3.bf16.msra.mxu0 %v4439_v48  ;;  %v4477_v32 = vld [vmem:[#allocation7 + $0xa8] ss:$12 sps:$4 sm:$0xff]  }
 0x11b   :  { %3977 = vmatprep.subr.bf16.mxu0 %v4442_v34  ;;  %v4523_v48 = vld [vmem:[#allocation7 + $0x248] ss:$12 sps:$4 sm:$0xff]   ;;  %v4480_v34 = vld [vmem:[#allocation7 + $0xc0] ss:$12 sps:$4 sm:$0xff]  }
 0x11d   :  { %3934 = vmatpush3.bf16.msra.mxu1 %v4417_v33  ;;  %v4482_v33 = vld [vmem:[#allocation7 + $0xc4] ss:$12 sps:$4 sm:$0xff]  }
 0x11e   :  { %3935 = vmatprep.subr.bf16.mxu1 %v4418_v35  ;;  %3978 = vmatpush3.bf16.msra.mxu0 %v4443_v36  ;;  %v4487_v35 = vld [vmem:[#allocation7 + $0xdc] ss:$12 sps:$4 sm:$0xff]   ;;  %v4485_v36 = vld [vmem:[#allocation7 + $0xd8] ss:$12 sps:$4 sm:$0xff]  }
 0x11f   :  { %3979 = vmatprep.subr.bf16.mxu0 %v4446_v16  ;;  %v4492_v16 = vld [vmem:[#allocation7 + $0xf4] ss:$12 sps:$4 sm:$0xff]  }
 0x121   :  { %3936 = vmatpush3.bf16.msra.mxu1 %v4419_v37  ;;  %v4490_v37 = vld [vmem:[#allocation7 + $0xf0] ss:$12 sps:$4 sm:$0xff]  }
 0x122   :  { %3937 = vmatprep.subr.bf16.mxu1 %v4420_v38  ;;  %3980 = vmatpush3.bf16.msra.mxu0 %v4447_v39  ;;  %v4497_v38 = vld [vmem:[#allocation7 + $0x10c] ss:$12 sps:$4 sm:$0xff]   ;;  %v4495_v39 = vld [vmem:[#allocation7 + $0x108] ss:$12 sps:$4 sm:$0xff]  }
 0x123   :  { %3981 = vmatprep.subr.bf16.mxu0 %v4450_v40  ;;  %v4502_v40 = vld [vmem:[#allocation7 + $0x124] ss:$12 sps:$4 sm:$0xff]  }
 0x125   :  { %3938 = vmatpush3.bf16.msra.mxu1 %v4421_v41  ;;  %v4500_v41 = vld [vmem:[#allocation7 + $0x120] ss:$12 sps:$4 sm:$0xff]  }
 0x126   :  { %3939 = vmatprep.subr.bf16.mxu1 %v4422_v42  ;;  %3982 = vmatpush3.bf16.msra.mxu0 %v4451_v43  ;;  %v4507_v42 = vld [vmem:[#allocation7 + $0x13c] ss:$12 sps:$4 sm:$0xff]   ;;  %v4505_v43 = vld [vmem:[#allocation7 + $0x138] ss:$12 sps:$4 sm:$0xff]  }
 0x127   :  { %3983 = vmatprep.subr.bf16.mxu0 %v4454_v44  ;;  %v4512_v44 = vld [vmem:[#allocation7 + $0x154] ss:$12 sps:$4 sm:$0xff]  }
 0x129   :  { %3940 = vmatpush3.bf16.msra.mxu1 %v4423_v45  ;;  %v4510_v45 = vld [vmem:[#allocation7 + $0x150] ss:$12 sps:$4 sm:$0xff]  }
 0x12a   :  { %3947 = vmatprep.subr.bf16.mxu1 %v4424_v46  ;;  %3984 = vmatpush3.bf16.msra.mxu0 %v4455_v47  ;;  %v4517_v46 = vld [vmem:[#allocation7 + $0x16c] ss:$12 sps:$4 sm:$0xff]   ;;  %v4515_v47 = vld [vmem:[#allocation7 + $0x168] ss:$12 sps:$4 sm:$0xff]  }
 0x12b   :  { %3991 = vmatprep.subr.bf16.mxu0 %v4483_v49  ;;  %v4522_v49 = vld [vmem:[#allocation7 + $0x184] ss:$12 sps:$4 sm:$0xff]  }
 0x12c   :  { %1947 = vmatmul.mubr.bf16.vlgmr.msra.gmra.mrb[4].mxu1 %v4912_v5  ;;  %v4440_v5 = vld [vmem:[#allocation5 + $0x470] ss:$20 sps:$4 sm:$0xff]  }
 0x12d   :  { %3948 = vmatpush3.bf16.msra.mxu1 %v4425_v50  ;;  %1986 = vmatprep.mubr.bf16.mxu1 %v4920_v30  ;;  %v4503_v30 = vld [vmem:[#allocation7 + $0x128] ss:$12 sps:$4 sm:$0xff]   ;;  %v374_v50 = vlaneseq }
 0x12e   :  { %3949 = vmatprep.subr.bf16.mxu1 %v4428_v51  ;;  %2027 = vmatmul.mubr.bf16.vlgmr.msra.gmra.mrb[4].mxu0 %v4940_v18  ;;  %v4464_v18 = vld [vmem:[#allocation7 + $0x34] ss:$12 sps:$4 sm:$0xff]  }
 0x12f   :  { %3992 = vmatpush3.bf16.msra.mxu0 %v4484_v52  ;;  %v4950_v51 = vshrl.u32 %v374_v50, 7 }
 0x130   :  { %3993 = vmatprep.subr.bf16.mxu0 %v4488_v53  ;;  %v4956_v53 = vld [vmem:[%s5019_s2] sm:$0x1f] }
 0x131   :  { %3950 = vmatpush3.bf16.msra.mxu1 %v4429_v54  ;;  %v392_v52 = vsub.s32 4, %v4950_v51 }
 0x132   :  { %3951 = vmatprep.subr.bf16.mxu1 %v4432_v55  ;;  %v4962_v55 = vsub.s32 0, %v4950_v51 }
 0x133   :  { %3994 = vmatpush3.bf16.msra.mxu0 %v4489_v56  ;;  %v4959_v54 = vrot.slane %v4956_v53, %v392_v52  ;;  %v4965_v56 = vsub.s32 1, %v4950_v51 }
 0x134   :  { %3995 = vmatprep.subr.bf16.mxu0 %v4493_v57  ;;  %v388_v57 = vsub.s32 3, %v4950_v51 }
 0x135   :  { %3952 = vmatpush3.bf16.msra.mxu1 %v4433_v58  ;;  %v377_v58 = vrot.slane %v4956_v53, %v4962_v55 }
 0x136   :  { %3953 = vmatprep.subr.bf16.mxu1 %v4436_v59  ;;  %v381_v59 = vrot.slane %v4956_v53, %v4965_v56 }
 0x137   :  { %3996 = vmatpush3.bf16.msra.mxu0 %v4494_v60  ;;  %v389_v60 = vrot.slane %v4956_v53, %v388_v57  ;;  %v4562_v57 = vld [vmem:[#allocation7 + $0x244] ss:$12 sps:$4 sm:$0xff]  }
 0x138   :  { %3997 = vmatprep.subr.bf16.mxu0 %v4498_v61 }
 0x139   :  { %3954 = vmatpush3.bf16.msra.mxu1 %v4437_v62 }
 0x13a   :  { %3955 = vmatprep.subr.bf16.mxu1 %v4440_v5 }
 0x13b   :  { %3998 = vmatpush3.bf16.msra.mxu0 %v4499_v63 }
 0x13c   :  { %3999 = vmatprep.subr.bf16.mxu0 %v4503_v30 }
 0x13d   :  { %3956 = vmatpush3.bf16.msra.mxu1 %v4441_v0 }
 0x13e   :  { %3957 = vmatprep.subr.bf16.mxu1 %v4444_v1 }
 0x13f   :  { %4000 = vmatpush3.bf16.msra.mxu0 %v4504_v2 }
 0x140   :  { %4001 = vmatprep.subr.bf16.mxu0 %v4508_v3 }
 0x141   :  { %3958 = vmatpush3.bf16.msra.mxu1 %v4445_v4 }
 0x142   :  { %3959 = vmatprep.subr.bf16.mxu1 %v4448_v6 }
 0x143   :  { %4002 = vmatpush3.bf16.msra.mxu0 %v4509_v7 }
 0x144   :  { %4003 = vmatprep.subr.bf16.mxu0 %v4513_v25  ;;  %v4537_v25 = vld [vmem:[#allocation7 + $0x1cc] ss:$12 sps:$4 sm:$0xff]  }
 0x145   :  { %3960 = vmatpush3.bf16.msra.mxu1 %v4449_v8 }
 0x146   :  { %3961 = vmatprep.subr.bf16.mxu1 %v4452_v10 }
 0x147   :  { %4004 = vmatpush3.bf16.msra.mxu0 %v4514_v26  ;;  %v4535_v26 = vld [vmem:[#allocation7 + $0x1c8] ss:$12 sps:$4 sm:$0xff]  }
 0x148   :  { %4005 = vmatprep.subr.bf16.mxu0 %v4518_v28  ;;  %v4542_v28 = vld [vmem:[#allocation7 + $0x1e4] ss:$12 sps:$4 sm:$0xff]  }
 0x149   :  { %3962 = vmatpush3.bf16.msra.mxu1 %v4453_v11 }
 0x14a   :  { %2861 = vmatprep.subr.bf16.mxu1 %v4458_v12  ;;  %v4520_v12 = vld [vmem:[#allocation7 + $0x180] ss:$12 sps:$4 sm:$0xff]  }
 0x14b   :  { %4006 = vmatpush3.bf16.msra.mxu0 %v4519_v31  ;;  %v4540_v31 = vld [vmem:[#allocation7 + $0x1e0] ss:$12 sps:$4 sm:$0xff]  }
 0x14c   :  { %1987 = vmatmul.mubr.bf16.vlgmr.msra.gmra.mrb[8].mxu1 %v4926_v9  ;;  %v4476_v9 = vld [vmem:[#allocation7 + $0x94] ss:$12 sps:$4 sm:$0xff]   ;;  %4013 = vmatprep.subr.bf16.mxu0 %v4523_v48  ;;  %v384_v48 = vsub.s32 2, %v4950_v51 }
 0x14d   :  { %2862 = vmatpush1.bf16.msra.mxu1 %v4456_v14  ;;  %v4524_v14 = vld [vmem:[#allocation7 + $0x188] ss:$12 sps:$4 sm:$0xff]  }
 0x14e   :  { %2863 = vmatprep.subr.bf16.mxu1 %v4461_v15 }
 0x151   :  { %2864 = vmatpush1.bf16.msra.mxu1 %v4459_v17  ;;  %v4527_v17 = vld [vmem:[#allocation7 + $0x19c] ss:$12 sps:$4 sm:$0xff]  }
 0x152   :  { %2865 = vmatprep.subr.bf16.mxu1 %v4464_v18  ;;  %v4528_v18 = vld [vmem:[#allocation7 + $0x260] ss:$12 sps:$4 sm:$0xff]  }
 0x155   :  { %2866 = vmatpush1.bf16.msra.mxu1 %v4462_v19 }
 0x156   :  { %2867 = vmatprep.subr.bf16.mxu1 %v4467_v20  ;;  %v4525_v20 = vld [vmem:[#allocation7 + $0x198] ss:$12 sps:$4 sm:$0xff]  }
 0x159   :  { %2868 = vmatpush1.bf16.msra.mxu1 %v4465_v21  ;;  %v4529_v21 = vld [vmem:[#allocation7 + $0x1a0] ss:$12 sps:$4 sm:$0xff]  }
 0x15a   :  { %2869 = vmatprep.subr.bf16.mxu1 %v4470_v22  ;;  %v4532_v22 = vld [vmem:[#allocation7 + $0x1b4] ss:$12 sps:$4 sm:$0xff]  }
 0x15d   :  { %2870 = vmatpush1.bf16.msra.mxu1 %v4468_v23  ;;  %v4533_v23 = vld [vmem:[#allocation7 + $0x278] ss:$12 sps:$4 sm:$0xff]  }
 0x15e   :  { %2871 = vmatprep.subr.bf16.mxu1 %v4473_v24  ;;  %v4530_v24 = vld [vmem:[#allocation7 + $0x1b0] ss:$12 sps:$4 sm:$0xff]  }
 0x161   :  { %2872 = vmatpush1.bf16.msra.mxu1 %v4471_v13  ;;  %v4534_v13 = vld [vmem:[#allocation7 + $0x1b8] ss:$12 sps:$4 sm:$0xff]  }
 0x162   :  { %2873 = vmatprep.subr.bf16.mxu1 %v4476_v9  ;;  %v4538_v9 = vld [vmem:[#allocation7 + $0x290] ss:$12 sps:$4 sm:$0xff]  }
 0x165   :  { %2874 = vmatpush1.bf16.msra.mxu1 %v4474_v27  ;;  %v4539_v27 = vld [vmem:[#allocation7 + $0x1d0] ss:$12 sps:$4 sm:$0xff]  }
 0x166   :  { %2875 = vmatprep.subr.bf16.mxu1 %v4479_v29  ;;  %v4543_v29 = vld [vmem:[#allocation7 + $0x2a8] ss:$12 sps:$4 sm:$0xff]  }
 0x169   :  { %2876 = vmatpush1.bf16.msra.mxu1 %v4477_v32  ;;  %v4544_v32 = vld [vmem:[#allocation7 + $0x1e8] ss:$12 sps:$4 sm:$0xff]  }
 0x16a   :  { %2877 = vmatprep.subr.bf16.mxu1 %v4482_v33  ;;  %v4547_v33 = vld [vmem:[#allocation7 + $0x1fc] ss:$12 sps:$4 sm:$0xff]  }
 0x16d   :  { %2878 = vmatpush1.bf16.msra.mxu1 %v4480_v34  ;;  %v4548_v34 = vld [vmem:[#allocation7 + $0x2c0] ss:$12 sps:$4 sm:$0xff]  }
 0x16e   :  { %2879 = vmatprep.subr.bf16.mxu1 %v4487_v35  ;;  %v4545_v35 = vld [vmem:[#allocation7 + $0x1f8] ss:$12 sps:$4 sm:$0xff]  }
 0x171   :  { %2880 = vmatpush1.bf16.msra.mxu1 %v4485_v36  ;;  %v4549_v36 = vld [vmem:[#allocation7 + $0x200] ss:$12 sps:$4 sm:$0xff]  }
 0x172   :  { %2881 = vmatprep.subr.bf16.mxu1 %v4492_v16  ;;  %v385_v16 = vrot.slane %v4956_v53, %v384_v48 }
 0x175   :  { %2882 = vmatpush1.bf16.msra.mxu1 %v4490_v37  ;;  %v4552_v37 = vld [vmem:[#allocation7 + $0x214] ss:$12 sps:$4 sm:$0xff]  }
 0x176   :  { %2883 = vmatprep.subr.bf16.mxu1 %v4497_v38  ;;  %v4553_v38 = vld [vmem:[#allocation7 + $0x2d8] ss:$12 sps:$4 sm:$0xff]  }
 0x179   :  { %2884 = vmatpush1.bf16.msra.mxu1 %v4495_v39  ;;  %v4550_v39 = vld [vmem:[#allocation7 + $0x210] ss:$12 sps:$4 sm:$0xff]  }
 0x17a   :  { %2885 = vmatprep.subr.bf16.mxu1 %v4502_v40  ;;  %v4554_v40 = vld [vmem:[#allocation7 + $0x218] ss:$12 sps:$4 sm:$0xff]  }
 0x17d   :  { %2886 = vmatpush1.bf16.msra.mxu1 %v4500_v41 }
 0x17e   :  { %2887 = vmatprep.subr.bf16.mxu1 %v4507_v42  ;;  %v4557_v42 = vld [vmem:[#allocation7 + $0x22c] ss:$12 sps:$4 sm:$0xff]  }
 0x181   :  { %2888 = vmatpush1.bf16.msra.mxu1 %v4505_v43  ;;  %v4558_v43 = vld [vmem:[#allocation7 + $0x2f0] ss:$12 sps:$4 sm:$0xff]  }
 0x182   :  { %2889 = vmatprep.subr.bf16.mxu1 %v4512_v44 }
 0x185   :  { %2890 = vmatpush1.bf16.msra.mxu1 %v4510_v45 }
 0x186   :  { %2891 = vmatprep.subr.bf16.mxu1 %v4517_v46  ;;  %v4555_v46 = vld [vmem:[#allocation7 + $0x228] ss:$12 sps:$4 sm:$0xff]  }
 0x189   :  { %2892 = vmatpush1.bf16.msra.mxu1 %v4515_v47  ;;  %v4559_v47 = vld [vmem:[#allocation7 + $0x230] ss:$12 sps:$4 sm:$0xff]  }
 0x18a   :  { %2902 = vmatprep.subr.bf16.mxu1 %v4522_v49 }
 0x1df   :  { %v1784_v61 = vpop.f32.mrb[0].mxu0  ;;  %v4973_v62 = vpop.f32.mrb[0].mxu1 }
 0x1e0   :  { %v4064_v5 = vadd.f32 %v1784_v61, %v377_v58  ;;  %v1786_v63 = vpop.f32.mrb[1].mxu0  ;;  %v1909_v30 = vpop.f32.mrb[1].mxu1  ;;  %v4066_v41 = vadd.f32 %v4973_v62, %v385_v16  ;;  %v4595_v16 = vld [vmem:[#allocation7 + $0x318] ss:$12 sps:$4 sm:$0xff]  }
 0x1e1   :  { %v4065_v0 = vadd.f32 %v1786_v63, %v381_v59  ;;  %v4067_v1 = vadd.f32 %v1909_v30, %v389_v60  ;;  %v1788_v2 = vpop.f32.mrb[2].mxu0  ;;  %v1911_v3 = vpop.f32.mrb[2].mxu1  ;;  %v4560_v63 = vld [vmem:[#allocation7 + $0x240] ss:$12 sps:$4 sm:$0xff]   ;;  %v4566_v30 = vld [vmem:[#allocation7 + $0x308] ss:$12 sps:$4 sm:$0xff]  }
 0x1e2   :  { %v2034_v4 = vmax.f32 %v4064_v5, 0.0  ;;  %v1789_v6 = vpop.f32.mrb[3].mxu0  ;;  %v1912_v7 = vpop.f32.mrb[3].mxu1  ;;  %v2036_v53 = vmax.f32 %v4066_v41, 0.0  ;;  %v4816_v2 = vmov 0.0  }
 0x1e3   :  { %v2035_v8 = vmax.f32 %v4065_v0, 0.0  ;;  %v2037_v10 = vmax.f32 %v4067_v1, 0.0  ;;  %v4565_v1 = vld [vmem:[#allocation7 + $0x25c] ss:$12 sps:$4 sm:$0xff]   ;;  %v4563_v3 = vld [vmem:[#allocation7 + $0x258] ss:$12 sps:$4 sm:$0xff]  }
 0x1e4   :  { %v2039_v15 = vpack.c.bf16 %v2034_v4, %v2034_v4  ;;  %v4985_v0 = vpack.c.bf16 %v2036_v53, %v2036_v53  ;;  %v4569_v4 = vld [vmem:[#allocation7 + $0x274] ss:$12 sps:$4 sm:$0xff]   ;;  %v4567_v6 = vld [vmem:[#allocation7 + $0x270] ss:$12 sps:$4 sm:$0xff]   ;;  %v4574_v7 = vld [vmem:[#allocation7 + $0x338] ss:$12 sps:$4 sm:$0xff]  }
 0x1e5   :  { %v2040_v11 = vpack.c.bf16 %v2035_v8, %v2035_v8  ;;  %v2042_v19 = vpack.c.bf16 %v2037_v10, %v2037_v10  ;;  %v4573_v8 = vld [vmem:[#allocation7 + $0x28c] ss:$12 sps:$4 sm:$0xff]   ;;  %v4571_v10 = vld [vmem:[#allocation7 + $0x288] ss:$12 sps:$4 sm:$0xff]  }
 0x1e6   :  { %v4601_v41 = vld [vmem:[#allocation7 + $0x348] ss:$12 sps:$4 sm:$0xff]   ;;  %v4618_v53 = vld [vmem:[#allocation8 + $0x4] ss:$8 sps:$4 sm:$0xff]  }
 0x1e7   :  { %2893 = vmatprep.mubr.bf16.mxu1 %v2040_v11  ;;  %3016 = vmatprep.mubr.bf16.mxu0 %v2040_v11  ;;  %v4578_v11 = vld [vmem:[#allocation7 + $0x350] ss:$12 sps:$4 sm:$0xff]  }
 0x1e8   :  { %2894 = vmatmul.mubr.bf16.vlgmr.msra.gmra.mrb[12].mxu1 %v2039_v15  ;;  %3017 = vmatmul.mubr.bf16.vlgmr.msra.gmra.mrb[8].mxu0 %v2039_v15  ;;  %v4582_v15 = vld [vmem:[#allocation7 + $0x368] ss:$12 sps:$4 sm:$0xff]  }
 0x1e9   :  { %2903 = vmatpush1.bf16.msra.mxu1 %v4520_v12  ;;  %4014 = vmatpush3.bf16.msra.mxu0 %v4524_v14  ;;  %v4577_v12 = vld [vmem:[#allocation7 + $0x2a4] ss:$12 sps:$4 sm:$0xff]   ;;  %v4575_v14 = vld [vmem:[#allocation7 + $0x2a0] ss:$12 sps:$4 sm:$0xff]  }
 0x1ea   :  { %2934 = vmatprep.mubr.bf16.mxu1 %v2042_v19  ;;  %3056 = vmatprep.mubr.bf16.mxu0 %v2042_v19  ;;  %v4586_v19 = vld [vmem:[#allocation7 + $0x380] ss:$12 sps:$4 sm:$0xff]  }
 0x1eb   :  { %2904 = vmatprep.subr.bf16.mxu1 %v4527_v17  ;;  %4015 = vmatprep.subr.bf16.mxu0 %v4528_v18  ;;  %v4581_v17 = vld [vmem:[#allocation7 + $0x2bc] ss:$12 sps:$4 sm:$0xff]   ;;  %v4579_v18 = vld [vmem:[#allocation7 + $0x2b8] ss:$12 sps:$4 sm:$0xff]  }
 0x1ed   :  { %2905 = vmatpush1.bf16.msra.mxu1 %v4525_v20  ;;  %4016 = vmatpush3.bf16.msra.mxu0 %v4529_v21  ;;  %v4585_v20 = vld [vmem:[#allocation7 + $0x2d4] ss:$12 sps:$4 sm:$0xff]   ;;  %v4583_v21 = vld [vmem:[#allocation7 + $0x2d0] ss:$12 sps:$4 sm:$0xff]  }
 0x1ee   :  { %2906 = vmatprep.subr.bf16.mxu1 %v4532_v22  ;;  %4017 = vmatprep.subr.bf16.mxu0 %v4533_v23  ;;  %v4590_v22 = vld [vmem:[#allocation7 + $0x398] ss:$12 sps:$4 sm:$0xff]  }
 0x1ef   :  { %v4589_v23 = vld [vmem:[#allocation7 + $0x2ec] ss:$12 sps:$4 sm:$0xff]  }
 0x1f1   :  { %2907 = vmatpush1.bf16.msra.mxu1 %v4530_v24  ;;  %4018 = vmatpush3.bf16.msra.mxu0 %v4534_v13 }
 0x1f2   :  { %2908 = vmatprep.subr.bf16.mxu1 %v4537_v25  ;;  %4019 = vmatprep.subr.bf16.mxu0 %v4538_v9  ;;  %v4587_v9 = vld [vmem:[#allocation7 + $0x2e8] ss:$12 sps:$4 sm:$0xff]  }
 0x1f5   :  { %2909 = vmatpush1.bf16.msra.mxu1 %v4535_v26  ;;  %4020 = vmatpush3.bf16.msra.mxu0 %v4539_v27  ;;  %v4594_v26 = vld [vmem:[#allocation7 + $0x3b0] ss:$12 sps:$4 sm:$0xff]  }
 0x1f6   :  { %2910 = vmatprep.subr.bf16.mxu1 %v4542_v28  ;;  %4021 = vmatprep.subr.bf16.mxu0 %v4543_v29  ;;  %v4593_v28 = vld [vmem:[#allocation7 + $0x304] ss:$12 sps:$4 sm:$0xff]  }
 0x1f9   :  { %2911 = vmatpush1.bf16.msra.mxu1 %v4540_v31  ;;  %4022 = vmatpush3.bf16.msra.mxu0 %v4544_v32 }
 0x1fa   :  { %2912 = vmatprep.subr.bf16.mxu1 %v4547_v33  ;;  %4023 = vmatprep.subr.bf16.mxu0 %v4548_v34  ;;  %v4591_v33 = vld [vmem:[#allocation7 + $0x300] ss:$12 sps:$4 sm:$0xff]   ;;  %v4597_v34 = vld [vmem:[#allocation7 + $0x31c] ss:$12 sps:$4 sm:$0xff]  }
 0x1fd   :  { %2913 = vmatpush1.bf16.msra.mxu1 %v4545_v35  ;;  %4024 = vmatpush3.bf16.msra.mxu0 %v4549_v36 }
 0x1fe   :  { %2914 = vmatprep.subr.bf16.mxu1 %v4552_v37  ;;  %4025 = vmatprep.subr.bf16.mxu0 %v4553_v38  ;;  %v4818_v37 = vmov 0   ;;  %v4600_v38 = vld [vmem:[#allocation7 + $0x334] ss:$12 sps:$4 sm:$0xff]  }
 0x1ff   :  { %v3941_v44 = vpop.f32.mrb[4].mxu1 }
 0x200   :  { %v3942_v45 = vpop.f32.mrb[5].mxu1 }
 0x201   :  { %2915 = vmatpush1.bf16.msra.mxu1 %v4550_v39  ;;  %4026 = vmatpush3.bf16.msra.mxu0 %v4554_v40  ;;  %v3943_v49 = vadd.f32 %v3942_v45, %v3941_v44  ;;  %v3944_v50 = vpop.f32.mrb[6].mxu1  ;;  %v3985_v52 = vpop.f32.mrb[4].mxu0  ;;  %v4598_v39 = vld [vmem:[#allocation7 + $0x330] ss:$12 sps:$4 sm:$0xff]   ;;  %v4603_v40 = vld [vmem:[#allocation7 + $0x34c] ss:$12 sps:$4 sm:$0xff]  }
 0x202   :  { %2916 = vmatprep.subr.bf16.mxu1 %v4557_v42  ;;  %4027 = vmatprep.subr.bf16.mxu0 %v4558_v43  ;;  %v3945_v58 = vpop.f32.mrb[7].mxu1  ;;  %v3986_v59 = vpop.f32.mrb[5].mxu0  ;;  %v4606_v42 = vld [vmem:[#allocation7 + $0x364] ss:$12 sps:$4 sm:$0xff]   ;;  %v4604_v43 = vld [vmem:[#allocation7 + $0x360] ss:$12 sps:$4 sm:$0xff]  }
 0x203   :  { %v4981_v60 = vadd.f32 %v3943_v49, %v4959_v54  ;;  %v4983_v61 = vadd.f32 %v3986_v59, %v3985_v52  ;;  %v3988_v62 = vpop.f32.mrb[6].mxu0  ;;  %v4570_v54 = vld [vmem:[#allocation7 + $0x320] ss:$12 sps:$4 sm:$0xff]   ;;  %v4609_v44 = vld [vmem:[#allocation7 + $0x37c] ss:$12 sps:$4 sm:$0xff]  }
 0x204   :  { %v3989_v5 = vpop.f32.mrb[7].mxu0  ;;  %v4607_v45 = vld [vmem:[#allocation7 + $0x378] ss:$12 sps:$4 sm:$0xff]   ;;  %v4613_v50 = vld [vmem:[#allocation7 + $0x3a8] ss:$12 sps:$4 sm:$0xff]  }
 0x205   :  { %2917 = vmatpush1.bf16.msra.mxu1 %v4555_v46  ;;  %4028 = vmatpush3.bf16.msra.mxu0 %v4559_v47  ;;  %v4612_v46 = vld [vmem:[#allocation7 + $0x394] ss:$12 sps:$4 sm:$0xff]   ;;  %v4610_v47 = vld [vmem:[#allocation7 + $0x390] ss:$12 sps:$4 sm:$0xff]   ;;  %v4615_v49 = vld [vmem:[#allocation7 + $0x3ac] ss:$12 sps:$4 sm:$0xff]  }
 0x206   :  { %2918 = vmatprep.subr.bf16.mxu1 %v4562_v57  ;;  %4044 = vmatprep.subr.bf16.mxu0 %v4816_v2  ;;  %v4616_v52 = vld [vmem:[#allocation8] ss:$8 sps:$4 sm:$0xff]   ;;  %v4621_v57 = vld [vmem:[#allocation8 + $0x14] ss:$8 sps:$4 sm:$0xff]   ;;  %v4619_v58 = vld [vmem:[#allocation8 + $0x10] ss:$8 sps:$4 sm:$0xff]  }
 0x207   :  { %v4624_v59 = vld [vmem:[#allocation8 + $0x24] ss:$8 sps:$4 sm:$0xff]   ;;  %v4625_v62 = vld [vmem:[#allocation8 + $0x30] ss:$8 sps:$4 sm:$0xff]  }
 0x208   :  { %3057 = vmatmul.mubr.bf16.vlgmr.msra.gmra.mrb[12].mxu0 %v4985_v0  ;;  %v4630_v5 = vld [vmem:[#allocation8 + $0x44] ss:$8 sps:$4 sm:$0xff]  }
 0x209   :  { %2919 = vmatpush1.bf16.msra.mxu1 %v4560_v63  ;;  %4045 = vmatpush3.bf16.msra.mxu0 %v4566_v30  ;;  %v4628_v63 = vld [vmem:[#allocation8 + $0x40] ss:$8 sps:$4 sm:$0xff]   ;;  %v4633_v30 = vld [vmem:[#allocation8 + $0x54] ss:$8 sps:$4 sm:$0xff]  }
 0x20a   :  { %2920 = vmatprep.subr.bf16.mxu1 %v4565_v1  ;;  %4046 = vmatprep.subr.bf16.mxu0 %v4816_v2  ;;  %v4636_v1 = vld [vmem:[#allocation8 + $0x64] ss:$8 sps:$4 sm:$0xff]  }
 0x20b   :  { %4060 = vmatprep.mubr.msk.bf16.mxu0 %vm4817_vm0, %v4816_v2 }
 0x20d   :  { %2921 = vmatpush1.bf16.msra.mxu1 %v4563_v3  ;;  %4047 = vmatpush3.bf16.msra.mxu0 %v4570_v54  ;;  %v4639_v3 = vld [vmem:[#allocation8 + $0x74] ss:$8 sps:$4 sm:$0xff]   ;;  %v4637_v54 = vld [vmem:[#allocation8 + $0x70] ss:$8 sps:$4 sm:$0xff]  }
 0x20e   :  { %2922 = vmatprep.subr.bf16.mxu1 %v4569_v4  ;;  %4048 = vmatprep.subr.bf16.mxu0 %v4816_v2  ;;  %v4642_v4 = vld [vmem:[#allocation8 + $0x84] ss:$8 sps:$4 sm:$0xff]  }
 0x211   :  { %2923 = vmatpush1.bf16.msra.mxu1 %v4567_v6  ;;  %4049 = vmatpush3.bf16.msra.mxu0 %v4574_v7  ;;  %v4640_v6 = vld [vmem:[#allocation8 + $0x80] ss:$8 sps:$4 sm:$0xff]   ;;  %v4645_v7 = vld [vmem:[#allocation8 + $0x94] ss:$8 sps:$4 sm:$0xff]  }
 0x212   :  { %2924 = vmatprep.subr.bf16.mxu1 %v4573_v8  ;;  %4050 = vmatprep.subr.bf16.mxu0 %v4816_v2  ;;  %v4643_v8 = vld [vmem:[#allocation8 + $0x90] ss:$8 sps:$4 sm:$0xff]  }
 0x215   :  { %2925 = vmatpush1.bf16.msra.mxu1 %v4571_v10  ;;  %4051 = vmatpush3.bf16.msra.mxu0 %v4578_v11  ;;  %v4648_v10 = vld [vmem:[#allocation8 + $0xa4] ss:$8 sps:$4 sm:$0xff]   ;;  %v4646_v11 = vld [vmem:[#allocation8 + $0xa0] ss:$8 sps:$4 sm:$0xff]  }
 0x216   :  { %2926 = vmatprep.subr.bf16.mxu1 %v4577_v12  ;;  %4052 = vmatprep.subr.bf16.mxu0 %v4816_v2  ;;  %v4651_v12 = vld [vmem:[#allocation8 + $0xb4] ss:$8 sps:$4 sm:$0xff]  }
 0x219   :  { %2927 = vmatpush1.bf16.msra.mxu1 %v4575_v14  ;;  %4053 = vmatpush3.bf16.msra.mxu0 %v4582_v15  ;;  %v4649_v14 = vld [vmem:[#allocation8 + $0xb0] ss:$8 sps:$4 sm:$0xff]   ;;  %v4654_v15 = vld [vmem:[#allocation8 + $0xc4] ss:$8 sps:$4 sm:$0xff]  }
 0x21a   :  { %2928 = vmatprep.subr.bf16.mxu1 %v4581_v17  ;;  %4054 = vmatprep.subr.bf16.mxu0 %v4816_v2  ;;  %v4652_v17 = vld [vmem:[#allocation8 + $0xc0] ss:$8 sps:$4 sm:$0xff]  }
 0x21d   :  { %2929 = vmatpush1.bf16.msra.mxu1 %v4579_v18  ;;  %4055 = vmatpush3.bf16.msra.mxu0 %v4586_v19  ;;  %v4657_v18 = vld [vmem:[#allocation8 + $0xd4] ss:$8 sps:$4 sm:$0xff]   ;;  %v4655_v19 = vld [vmem:[#allocation8 + $0xd0] ss:$8 sps:$4 sm:$0xff]  }
 0x21e   :  { %2930 = vmatprep.subr.bf16.mxu1 %v4585_v20  ;;  %4056 = vmatprep.subr.bf16.mxu0 %v4816_v2  ;;  %v4660_v20 = vld [vmem:[#allocation8 + $0xe4] ss:$8 sps:$4 sm:$0xff]  }
 0x21f   :  { %v3963_v24 = vpop.f32.mrb[8].mxu1 }
 0x220   :  { %v3964_v13 = vpop.f32.mrb[9].mxu1 }
 0x221   :  { %v3965_v25 = vadd.f32 %v3964_v13, %v3963_v24  ;;  %2931 = vmatpush1.bf16.msra.mxu1 %v4583_v21  ;;  %4057 = vmatpush3.bf16.msra.mxu0 %v4590_v22  ;;  %v3966_v27 = vpop.f32.mrb[10].mxu1  ;;  %v4658_v21 = vld [vmem:[#allocation8 + $0xe0] ss:$8 sps:$4 sm:$0xff]   ;;  %v4663_v22 = vld [vmem:[#allocation8 + $0xf4] ss:$8 sps:$4 sm:$0xff]  }
 0x222   :  { %2932 = vmatprep.subr.bf16.mxu1 %v4589_v23  ;;  %4058 = vmatprep.subr.bf16.mxu0 %v4816_v2  ;;  %v3967_v29 = vpop.f32.mrb[11].mxu1  ;;  %v4634_v2 = vld [vmem:[#allocation8 + $0x60] ss:$8 sps:$4 sm:$0xff]   ;;  %v4661_v23 = vld [vmem:[#allocation8 + $0xf0] ss:$8 sps:$4 sm:$0xff]  }
 0x223   :  { %v1989_v31 = vadd.f32 %v3965_v25, %v4981_v60  ;;  %v4622_v60 = vld [vmem:[#allocation8 + $0x20] ss:$8 sps:$4 sm:$0xff]   ;;  %v4666_v24 = vld [vmem:[#allocation8 + $0x104] ss:$8 sps:$4 sm:$0xff]  }
 0x225   :  { %v2029_v32 = vadd.f32 %v4983_v61, %v1989_v31  ;;  %2933 = vmatpush1.bf16.msra.mxu1 %v4587_v9  ;;  %4059 = vmatpush3.bf16.msra.mxu0 %v4594_v26  ;;  %v4627_v61 = vld [vmem:[#allocation8 + $0x34] ss:$8 sps:$4 sm:$0xff]  }
 0x226   :  { %2943 = vmatprep.subr.bf16.mxu1 %v4593_v28  ;;  %3410 = vmatprep.subr.bf16.mxu0 %v4618_v53  ;;  %v2204_v28 = vld [vmem:[%s5021_s4] sm:$0x7] }
 0x227   :  { %v2038_v35 = vmax.f32 %v2029_v32, 0.0  ;;  %v2217_v29 = vrot.slane %v2204_v28, %v384_v48 }
 0x228   :  { %2935 = vmatmul.mubr.bf16.vlgmr.msra.gmra.mrb[12].mxu1 %v4985_v0  ;;  %v4631_v0 = vld [vmem:[#allocation8 + $0x50] ss:$8 sps:$4 sm:$0xff]  }
 0x229   :  { %v2043_v36 = vpack.c.bf16 %v2038_v35, %v2038_v35  ;;  %2944 = vmatpush1.bf16.msra.mxu1 %v4591_v33  ;;  %2975 = vmatprep.mubr.bf16.mxu1 %v4818_v37 }
 0x22a   :  { %2945 = vmatprep.subr.bf16.mxu1 %v4597_v34 }
 0x22b   :  { %4061 = vmatmul.mubr.bf16.vlgmr.msra.gmra.mrb[16].mxu0 %v2043_v36 }
 0x22c   :  { %3411 = vmatpush1.bf16.msra.mxu0 %v4616_v52 }
 0x22d   :  { %2946 = vmatpush1.bf16.msra.mxu1 %v4595_v16  ;;  %3412 = vmatprep.subr.bf16.mxu0 %v4621_v57  ;;  %v4664_v57 = vld [vmem:[#allocation8 + $0x100] ss:$8 sps:$4 sm:$0xff]  }
 0x22e   :  { %2947 = vmatprep.subr.bf16.mxu1 %v4600_v38 }
 0x230   :  { %3413 = vmatpush1.bf16.msra.mxu0 %v4619_v58 }
 0x231   :  { %2948 = vmatpush1.bf16.msra.mxu1 %v4598_v39  ;;  %3414 = vmatprep.subr.bf16.mxu0 %v4624_v59  ;;  %v4669_v59 = vld [vmem:[#allocation8 + $0x114] ss:$8 sps:$4 sm:$0xff]  }
 0x232   :  { %2949 = vmatprep.subr.bf16.mxu1 %v4603_v40 }
 0x234   :  { %3415 = vmatpush1.bf16.msra.mxu0 %v4622_v60  ;;  %v4667_v60 = vld [vmem:[#allocation8 + $0x110] ss:$8 sps:$4 sm:$0xff]  }
 0x235   :  { %2950 = vmatpush1.bf16.msra.mxu1 %v4601_v41  ;;  %3416 = vmatprep.subr.bf16.mxu0 %v4627_v61  ;;  %v4672_v61 = vld [vmem:[#allocation8 + $0x124] ss:$8 sps:$4 sm:$0xff]  }
 0x236   :  { %2951 = vmatprep.subr.bf16.mxu1 %v4606_v42 }
 0x238   :  { %3417 = vmatpush1.bf16.msra.mxu0 %v4625_v62  ;;  %v4670_v62 = vld [vmem:[#allocation8 + $0x120] ss:$8 sps:$4 sm:$0xff]  }
 0x239   :  { %2952 = vmatpush1.bf16.msra.mxu1 %v4604_v43  ;;  %3418 = vmatprep.subr.bf16.mxu0 %v4630_v5  ;;  %v2209_v43 = vrot.slane %v2204_v28, %v4962_v55  ;;  %v4675_v5 = vld [vmem:[#allocation8 + $0x134] ss:$8 sps:$4 sm:$0xff]  }
 0x23a   :  { %2953 = vmatprep.subr.bf16.mxu1 %v4609_v44  ;;  %v2213_v44 = vrot.slane %v2204_v28, %v4965_v56 }
 0x23c   :  { %3419 = vmatpush1.bf16.msra.mxu0 %v4628_v63  ;;  %v4673_v63 = vld [vmem:[#allocation8 + $0x130] ss:$8 sps:$4 sm:$0xff]  }
 0x23d   :  { %2954 = vmatpush1.bf16.msra.mxu1 %v4607_v45  ;;  %3420 = vmatprep.subr.bf16.mxu0 %v4633_v30  ;;  %v4678_v30 = vld [vmem:[#allocation8 + $0x144] ss:$8 sps:$4 sm:$0xff]  }
 0x23e   :  { %2955 = vmatprep.subr.bf16.mxu1 %v4612_v46 }
 0x240   :  { %3421 = vmatpush1.bf16.msra.mxu0 %v4631_v0  ;;  %v4676_v0 = vld [vmem:[#allocation8 + $0x140] ss:$8 sps:$4 sm:$0xff]  }
 0x241   :  { %2956 = vmatpush1.bf16.msra.mxu1 %v4610_v47  ;;  %3422 = vmatprep.subr.bf16.mxu0 %v4636_v1  ;;  %v4681_v1 = vld [vmem:[#allocation8 + $0x154] ss:$8 sps:$4 sm:$0xff]  }
 0x242   :  { %2957 = vmatprep.subr.bf16.mxu1 %v4615_v49 }
 0x244   :  { %3423 = vmatpush1.bf16.msra.mxu0 %v4634_v2  ;;  %v4679_v2 = vld [vmem:[#allocation8 + $0x150] ss:$8 sps:$4 sm:$0xff]  }
 0x245   :  { %2958 = vmatpush1.bf16.msra.mxu1 %v4613_v50  ;;  %3424 = vmatprep.subr.bf16.mxu0 %v4639_v3  ;;  %v4684_v3 = vld [vmem:[#allocation8 + $0x164] ss:$8 sps:$4 sm:$0xff]  }
 0x248   :  { %2976 = vmatmul.mubr.bf16.vlgmr.msra.gmra.mrb[12].mxu1 %v2043_v36  ;;  %3425 = vmatpush1.bf16.msra.mxu0 %v4637_v54  ;;  %v4687_v54 = vld [vmem:[#allocation8 + $0x174] ss:$8 sps:$4 sm:$0xff]  }
 0x249   :  { %3426 = vmatprep.subr.bf16.mxu0 %v4642_v4  ;;  %v4685_v4 = vld [vmem:[#allocation8 + $0x170] ss:$8 sps:$4 sm:$0xff]  }
 0x24c   :  { %3427 = vmatpush1.bf16.msra.mxu0 %v4640_v6 }
 0x24d   :  { %3428 = vmatprep.subr.bf16.mxu0 %v4645_v7 }
 0x250   :  { %3429 = vmatpush1.bf16.msra.mxu0 %v4643_v8  ;;  %v3158_v8 = vld [vmem:[%s5023_s6] sm:$0x3] }
 0x251   :  { %3430 = vmatprep.subr.bf16.mxu0 %v4648_v10  ;;  %v3163_v10 = vrot.slane %v3158_v8, %v4962_v55 }
 0x254   :  { %3431 = vmatpush1.bf16.msra.mxu0 %v4646_v11  ;;  %v3167_v11 = vrot.slane %v3158_v8, %v4965_v56 }
 0x255   :  { %3432 = vmatprep.subr.bf16.mxu0 %v4651_v12 }
 0x258   :  { %3433 = vmatpush1.bf16.msra.mxu0 %v4649_v14 }
 0x259   :  { %3434 = vmatprep.subr.bf16.mxu0 %v4654_v15 }
 0x25c   :  { %3435 = vmatpush1.bf16.msra.mxu0 %v4652_v17 }
 0x25d   :  { %3436 = vmatprep.subr.bf16.mxu0 %v4657_v18 }
 0x260   :  { %3437 = vmatpush1.bf16.msra.mxu0 %v4655_v19 }
 0x261   :  { %3438 = vmatprep.subr.bf16.mxu0 %v4660_v20 }
 0x264   :  { %3439 = vmatpush1.bf16.msra.mxu0 %v4658_v21 }
 0x265   :  { %3440 = vmatprep.subr.bf16.mxu0 %v4663_v22 }
 0x268   :  { %3441 = vmatpush1.bf16.msra.mxu0 %v4661_v23 }
 0x269   :  { %3451 = vmatprep.subr.bf16.mxu0 %v4666_v24 }
 0x2bb   :  { %v4007_v13 = vpop.f32.mrb[8].mxu0 }
 0x2bc   :  { %v4008_v25 = vpop.f32.mrb[9].mxu0 }
 0x2bd   :  { %v4009_v9 = vadd.f32 %v4008_v25, %v4007_v13  ;;  %v4010_v26 = vpop.f32.mrb[10].mxu0 }
 0x2be   :  { %v4011_v27 = vpop.f32.mrb[11].mxu0 }
 0x2bf   :  { %v3019_v33 = vadd.f32 %v4009_v9, %v2217_v29 }
 0x2db   :  { %v4029_v31 = vpop.f32.mrb[12].mxu0 }
 0x2dc   :  { %v4030_v32 = vpop.f32.mrb[13].mxu0 }
 0x2dd   :  { %v4031_v34 = vadd.f32 %v4030_v32, %v4029_v31  ;;  %v4032_v35 = vpop.f32.mrb[14].mxu0 }
 0x2de   :  { %v4033_v36 = vpop.f32.mrb[15].mxu0 }
 0x2df   :  { %v3059_v16 = vadd.f32 %v4031_v34, %v3019_v33 }
 0x2fe   :  { %v3098_v38 = vpop.f32.mrb[16].mxu0 }
 0x2ff   :  { %v3099_v39 = vadd.f32 %v3098_v38, %v3059_v16  ;;  %v4062_v40 = vpop.f32.mrb[17].mxu0 }
 0x300   :  { %v3101_v41 = vpop.f32.mrb[18].mxu0 }
 0x301   :  { %v4063_v42 = vpop.f32.mrb[19].mxu0  ;;  %v3106_v6 = vmax.f32 %v3099_v39, 0.0 }
 0x303   :  { %v3109_v7 = vpack.c.bf16 %v3106_v6, %v3106_v6 }
 0x31b   :  { %v2977_v45 = vpop.f32.mrb[12].mxu1 }
 0x31c   :  { %v4068_v46 = vadd.f32 %v2977_v45, %v2209_v43  ;;  %v2979_v51 = vpop.f32.mrb[13].mxu1 }
 0x31d   :  { %v4069_v48 = vadd.f32 %v2979_v51, %v2213_v44  ;;  %v2981_v47 = vpop.f32.mrb[14].mxu1 }
 0x31e   :  { %v3104_v49 = vmax.f32 %v4068_v46, 0.0  ;;  %v2982_v50 = vpop.f32.mrb[15].mxu1 }
 0x31f   :  { %v3105_v52 = vmax.f32 %v4069_v48, 0.0 }
 0x320   :  { %v3107_v58 = vpack.c.bf16 %v3104_v49, %v3104_v49 }
 0x321   :  { %v3108_v53 = vpack.c.bf16 %v3105_v52, %v3105_v52 }
 0x323   :  { %3442 = vmatprep.mubr.bf16.mxu0 %v3108_v53 }
 0x324   :  { %3443 = vmatmul.mubr.bf16.vlgmr.msra.gmra.mrb[20].mxu0 %v3107_v58 }
 0x325   :  { %3452 = vmatpush1.bf16.msra.mxu0 %v4664_v57  ;;  %3483 = vmatprep.mubr.bf16.mxu0 %v4818_v37  ;;  %v4682_v37 = vld [vmem:[#allocation8 + $0x160] ss:$8 sps:$4 sm:$0xff]  }
 0x326   :  { %3453 = vmatprep.subr.bf16.mxu0 %v4669_v59 }
 0x329   :  { %3454 = vmatpush1.bf16.msra.mxu0 %v4667_v60 }
 0x32a   :  { %3455 = vmatprep.subr.bf16.mxu0 %v4672_v61 }
 0x32d   :  { %3456 = vmatpush1.bf16.msra.mxu0 %v4670_v62 }
 0x32e   :  { %3457 = vmatprep.subr.bf16.mxu0 %v4675_v5 }
 0x331   :  { %3458 = vmatpush1.bf16.msra.mxu0 %v4673_v63 }
 0x332   :  { %3459 = vmatprep.subr.bf16.mxu0 %v4678_v30 }
 0x335   :  { %3460 = vmatpush1.bf16.msra.mxu0 %v4676_v0 }
 0x336   :  { %3461 = vmatprep.subr.bf16.mxu0 %v4681_v1 }
 0x339   :  { %3462 = vmatpush1.bf16.msra.mxu0 %v4679_v2 }
 0x33a   :  { %3463 = vmatprep.subr.bf16.mxu0 %v4684_v3 }
 0x33d   :  { %3464 = vmatpush1.bf16.msra.mxu0 %v4682_v37 }
 0x33e   :  { %3465 = vmatprep.subr.bf16.mxu0 %v4687_v54 }
 0x341   :  { %3466 = vmatpush1.bf16.msra.mxu0 %v4685_v4 }
 0x344   :  { %3484 = vmatmul.mubr.bf16.vlgmr.msra.gmra.mrb[20].mxu0 %v3109_v7 }
 0x417   :  { %v3485_v12 = vpop.f32.mrb[20].mxu0 }
 0x418   :  { %v4070_v14 = vadd.f32 %v3485_v12, %v3163_v10  ;;  %v3487_v15 = vpop.f32.mrb[21].mxu0 }
 0x419   :  { %v4071_v17 = vadd.f32 %v3487_v15, %v3167_v11  ;;  %v3489_v18 = vpop.f32.mrb[22].mxu0 }
 0x41a   :  { %3492 = vst [vmem:[#allocation10] sm:$0xff] %v4070_v14  ;;  %v3490_v19 = vpop.f32.mrb[23].mxu0 }
 0x41b   :  { %3493 = vst [vmem:[#allocation10 + $0x8] sm:$0xff] %v4071_v17 }
 0x41c   :  { %4787 = shalt.err (!%p4784_p8)
}
 0x41d   :  { %s4788_s12 = scalar_lea.hbm %s5024_s7, 256 }
 0x41e   :  { %p4789_p9 = scmp.ne.s32.totalorder %s5024_s7, %s4788_s12  ;;  %p4792_p10 = scmp.lt.u32.totalorder %s4788_s12, %s5024_s7 }
 0x420   :  { %p4794_p11 = pnand %p4792_p10, %p4789_p9 }
 0x422   :  { %4797 = shalt.err (!%p4794_p11)
}
 0x423   :  { %3503 = dma.vmem_to_hbm [thread:$0]  %s3501_s9, 256, %s5024_s7, [#allocation4]  }
 0x424   :  { %4804 = dma.done.wait [#allocation4], 256  }
 0x425   :  { %4805 = vsyncadd [#allocation4], 4294967040 }
 0x426   :  { %3507 = vsyncpa [#allocation3], 1 }
 0x427   :  { %3508 = vsyncpa [#allocation6], 1 }
 0x428   :  { %3509 = vsyncpa [#allocation9], 1 }
 0x429   :  { %3510 = vsyncpa [#allocation4], 1 }

</bundles_post_ra>
